<compile_context>
chip_gen: v6e
topology: v6e:2x2x1
jax: 0.10.0
libtpu: 0.0.40
codegen_flags: <defaults>
</compile_context>

<pallas_src>
import math

import jax
import jax.numpy as jnp
from jax.experimental import pallas as pl
from jax.experimental.pallas import tpu as pltpu

# ---- model constants (from Bigram.py) ----
n_embd = 32
block_size = 8
num_heads = 4
head_size = n_embd // num_heads
n_blocks = 3
vocab_size = 65      # len(set(text)); `text` is not provided, 65 = char-Shakespeare vocab

C, T, H, HS = n_embd, block_size, num_heads, head_size
Hh = H * HS
V = vocab_size

LANE = 128           # lane-dense width for every matmul operand / output store
VPAD = 128           # vocab padded to a full lane width (one-hot contraction dim)

# ---- packed parameter slab row layout (every section starts on an 8-row boundary) ----
EMB_R0 = 0                              # rows [0,128):  token embedding (cols [0,C))
POS_R0 = EMB_R0 + VPAD                  # rows [128,136): position embedding
BLK_R0 = POS_R0 + T                     # per block: WQKV (128 rows) | WFF (32) | BFF (8)
BLK_WQKV, BLK_WFF, BLK_BFF = 0, LANE, LANE + C
BLK_ROWS = LANE + C + 8                 # 168
LM_R0 = BLK_R0 + n_blocks * BLK_ROWS    # 640
LM_W, LM_B = 0, LANE
SLAB_ROWS = LM_R0 + LANE + 8            # 776


def bigram_kernel(idx_ref, w_ref, o_ref):
    """Fused BigramModel forward on one (B*T)-row slab.

    idx_ref : (B*T, 1)  int32 token ids
    w_ref   : (SLAB_ROWS, LANE) f32 packed, lane-dense parameter slab
    o_ref   : (B*T, LANE) f32 logits (cols >= vocab_size are zero)
    """
    rows = idx_ref.shape[0]
    nb = rows // T                      # batches folded into this single grid step

    # --- token embedding as a one-hot MXU matmul + position embedding add ---
    ids = idx_ref[...]                                                # (rows, 1) i32
    col = jax.lax.broadcasted_iota(jnp.int32, (rows, VPAD), 1)
    onehot = (col == ids).astype(jnp.float32)                         # (rows, VPAD)
    emb_w = w_ref[EMB_R0:EMB_R0 + VPAD, :]                            # (VPAD, LANE)
    x = jnp.dot(onehot, emb_w, preferred_element_type=jnp.float32)    # (rows, LANE)
    pos = w_ref[POS_R0:POS_R0 + T, :]                                 # (T, LANE)
    x = x + jnp.concatenate([pos] * nb, axis=0)                       # cols >= C stay 0

    # Causal additive bias built once; finite value avoids inf-inf NaN risk.
    r_i = jax.lax.broadcasted_iota(jnp.int32, (T, T), 0)
    c_i = jax.lax.broadcasted_iota(jnp.int32, (T, T), 1)
    causal_bias = jnp.where(r_i >= c_i, 0.0, -1e30).astype(jnp.float32)

    # --- 3 x (MultiHeadAttention -> Linear(C,C) + erf-GELU), statically unrolled ---
    for blk in range(n_blocks):
        base = BLK_R0 + blk * BLK_ROWS
        wqkv = w_ref[base + BLK_WQKV:base + BLK_WQKV + LANE, :]       # (LANE, LANE)
        wff = w_ref[base + BLK_WFF:base + BLK_WFF + C, :]             # (C, LANE)
        bff = w_ref[base + BLK_BFF:base + BLK_BFF + 1, :]             # (1, LANE)

        # Fused Q|K|V projection for all heads: ONE full-lane MXU matmul.
        # (softmax scale n_embd**-0.5 already folded into the Q columns)
        qkv = jnp.dot(x, wqkv, preferred_element_type=jnp.float32)    # (rows, LANE)

        batches = []
        for b in range(nb):                 # nb*H = 8 tiny heads, kept in vregs
            r0 = b * T
            heads = []
            for h in range(H):
                c0 = h * HS
                q = qkv[r0:r0 + T, c0:c0 + HS]
                k = qkv[r0:r0 + T, Hh + c0:Hh + c0 + HS]
                v = qkv[r0:r0 + T, 2 * Hh + c0:2 * Hh + c0 + HS]
                # q @ k^T without materializing the transpose (contract dim 1 of both)
                s = jax.lax.dot_general(q, k, (((1,), (1,)), ((), ())),
                                        preferred_element_type=jnp.float32)
                s = s + causal_bias
                s = s - jnp.max(s, axis=-1, keepdims=True)
                p = jnp.exp(s)
                p = p * pl.reciprocal(jnp.sum(p, axis=-1, keepdims=True), approx=True)
                heads.append(jnp.dot(p, v, preferred_element_type=jnp.float32))  # (T, HS)
            batches.append(jnp.concatenate(heads, axis=1))            # (T, Hh)
        sa = jnp.concatenate(batches, axis=0)                         # (rows, Hh), no VMEM scratch

        # FeedForward: Linear(n_embd, n_embd) + exact erf-GELU. Padded lanes stay
        # zero, so x remains a lane-dense (rows, LANE) slab for the next block.
        h1 = jnp.dot(sa, wff, preferred_element_type=jnp.float32) + bff
        x = 0.5 * h1 * (1.0 + jax.lax.erf(h1 * (1.0 / math.sqrt(2.0))))

    # --- lm_head: Linear(n_embd, vocab_size) with bias (padded rows/cols are zero) ---
    lm_w = w_ref[LM_R0 + LM_W:LM_R0 + LM_W + LANE, :]                 # (LANE, LANE)
    lm_b = w_ref[LM_R0 + LM_B:LM_R0 + LM_B + 1, :]                    # (1, LANE)
    logits = jnp.dot(x, lm_w, preferred_element_type=jnp.float32) + lm_b
    o_ref[...] = logits.astype(o_ref.dtype)   # full-lane (128-wide) unmasked store


def pack_params(params):
    """Pack ALL model parameters into one lane-dense (SLAB_ROWS, LANE) f32 slab.

    Done ONCE outside the per-call path (review: hoist packing out of steady state).
    The attention scale n_embd**-0.5 (matching the PyTorch Head) is folded into
    the Q projection columns here.
    """
    scale = float(n_embd) ** -0.5
    slab = jnp.zeros((SLAB_ROWS, LANE), jnp.float32)
    slab = slab.at[EMB_R0:EMB_R0 + V, 0:C].set(params["tok_emb"])
    slab = slab.at[POS_R0:POS_R0 + T, 0:C].set(params["pos_emb"])
    for i, blk in enumerate(params["blocks"]):
        base = BLK_R0 + i * BLK_ROWS
        wq2 = jnp.transpose(blk["wq"], (1, 0, 2)).reshape(C, Hh) * scale
        wk2 = jnp.transpose(blk["wk"], (1, 0, 2)).reshape(C, Hh)
        wv2 = jnp.transpose(blk["wv"], (1, 0, 2)).reshape(C, Hh)
        slab = slab.at[base + BLK_WQKV:base + BLK_WQKV + C, 0:Hh].set(wq2)
        slab = slab.at[base + BLK_WQKV:base + BLK_WQKV + C, Hh:2 * Hh].set(wk2)
        slab = slab.at[base + BLK_WQKV:base + BLK_WQKV + C, 2 * Hh:3 * Hh].set(wv2)
        slab = slab.at[base + BLK_WFF:base + BLK_WFF + C, 0:C].set(blk["wff"])
        slab = slab.at[base + BLK_BFF, 0:C].set(blk["bff"])
    slab = slab.at[LM_R0 + LM_W:LM_R0 + LM_W + C, 0:V].set(params["lm_w"])
    slab = slab.at[LM_R0 + LM_B, 0:V].set(params["lm_b"])
    return slab


@jax.jit
def bigram_forward(idx_tokens, slab):
    """BigramModel.forward(idx) -> logits (B, T, vocab_size), one fused pallas_call."""
    B, Tin = idx_tokens.shape
    assert Tin == block_size, "kernel is specialized to T == block_size"
    rows = B * Tin
    idx2 = idx_tokens.reshape(rows, 1).astype(jnp.int32)

    out = pl.pallas_call(
        bigram_kernel,
        out_shape=jax.ShapeDtypeStruct((rows, LANE), jnp.float32),
        grid_spec=pltpu.PrefetchScalarGridSpec(
            num_scalar_prefetch=0,
            # Single grid step: at 16 rows the kernel is latency-bound; a v7x
            # megacore split or row tiling only pays off at >=128-256 rows/step.
            grid=(1,),
            in_specs=[
                pl.BlockSpec((rows, 1), lambda i: (0, 0)),            # token ids
                pl.BlockSpec((SLAB_ROWS, LANE), lambda i: (0, 0)),    # packed params
            ],
            out_specs=pl.BlockSpec((rows, LANE), lambda i: (0, 0)),
        ),
        compiler_params=pltpu.CompilerParams(dimension_semantics=("arbitrary",)),
    )(idx2, slab)

    # Drop zero-padded lanes and restore (B, T, vocab). Layout plumbing only.
    return out[:, :V].reshape(B, Tin, V)


def reference_forward(idx_tokens, params):
    """Pure-JAX reference mirroring the PyTorch BigramModel forward (targets=None)."""
    B, Tin = idx_tokens.shape
    x = params["tok_emb"][idx_tokens] + params["pos_emb"][jnp.arange(Tin)]
    scale = n_embd ** (-0.5)
    tril = jnp.tril(jnp.ones((Tin, Tin), dtype=bool))
    for blk in params["blocks"]:
        outs = []
        for h in range(num_heads):
            k = x @ blk["wk"][h]
            q = x @ blk["wq"][h]
            v = x @ blk["wv"][h]
            wei = (q @ jnp.swapaxes(k, -2, -1)) * scale
            wei = jnp.where(tril, wei, -jnp.inf)
            wei = jax.nn.softmax(wei, axis=-1)
            outs.append(wei @ v)
        sa = jnp.concatenate(outs, axis=-1)
        h1 = sa @ blk["wff"] + blk["bff"]
        x = 0.5 * h1 * (1.0 + jax.lax.erf(h1 / jnp.sqrt(2.0)))
    return x @ params["lm_w"] + params["lm_b"]


if __name__ == "__main__":
    key = jax.random.PRNGKey(0)
    keys = jax.random.split(key, 16)
    B = 2

    # Deterministic synthetic parameters, stored as (in, out) so y = x @ W
    # (equivalent to PyTorch's x @ weight.T after transposing at init).
    params = {
        "tok_emb": jax.random.normal(keys[0], (vocab_size, n_embd), jnp.float32),
        "pos_emb": jax.random.normal(keys[1], (block_size, n_embd), jnp.float32),
        "blocks": [],
        "lm_w": jax.random.normal(keys[2], (n_embd, vocab_size), jnp.float32) * 0.1,
        "lm_b": jax.random.normal(keys[3], (vocab_size,), jnp.float32) * 0.1,
    }
    for i in range(n_blocks):
        kq, kk, kv, kw, kb = jax.random.split(keys[4 + i], 5)
        params["blocks"].append({
            "wq": jax.random.normal(kq, (num_heads, n_embd, head_size), jnp.float32) * 0.1,
            "wk": jax.random.normal(kk, (num_heads, n_embd, head_size), jnp.float32) * 0.1,
            "wv": jax.random.normal(kv, (num_heads, n_embd, head_size), jnp.float32) * 0.1,
            "wff": jax.random.normal(kw, (n_embd, n_embd), jnp.float32) * 0.1,
            "bff": jax.random.normal(kb, (n_embd,), jnp.float32) * 0.1,
        })

    idx_tokens = jax.random.randint(keys[10], (B, block_size), 0, vocab_size,
                                    dtype=jnp.int32)

    slab = pack_params(params)                 # one-time packing, off the hot path
    logits = jax.block_until_ready(bigram_forward(idx_tokens, slab))

    ref = reference_forward(idx_tokens, params)
    assert logits.shape == (B, block_size, vocab_size)
    # Tolerance covers the EUP approximate reciprocal used in the 3 stacked softmaxes.
    assert jnp.allclose(logits, ref, atol=5e-3, rtol=5e-3), "mismatch vs reference"

    print("KERNEL_OK")
</pallas_src>

<mosaic_0001>
module attributes {stable_mosaic.version = 11 : i64} {
  func.func @bigram_kernel(%arg0: i32, %arg1: memref<16x1xi32, #tpu.memory_space<vmem>>, %arg2: memref<776x128xf32, #tpu.memory_space<vmem>>, %arg3: memref<16x128xf32, #tpu.memory_space<vmem>>) attributes {dimension_semantics = [#tpu.dimension_semantics<arbitrary>], iteration_bounds = array<i64: 1>, scalar_prefetch = 0 : i64, scratch_operands = 0 : i64, tpu.core_type = #tpu.core_type<tc>, window_params = [{pipeline_mode = #tpu.pipeline_mode<synchronous>, transform_indices = @transform_0, window_bounds = array<i64: 16, 1>}, {pipeline_mode = #tpu.pipeline_mode<synchronous>, transform_indices = @transform_1, window_bounds = array<i64: 776, 128>}, {pipeline_mode = #tpu.pipeline_mode<synchronous>, transform_indices = @transform_2, window_bounds = array<i64: 16, 128>}]} {
    %c0 = arith.constant 0 : index
    %c0_0 = arith.constant 0 : index
    %0 = vector.load %arg1[%c0, %c0_0] : memref<16x1xi32, #tpu.memory_space<vmem>>, vector<16x1xi32>
    %1 = tpu.iota {dimensions = array<i32: 1>} : vector<16x128xi32>
    %2 = vector.broadcast %0 : vector<16x1xi32> to vector<16x128xi32>
    %3 = arith.cmpi eq, %1, %2 : vector<16x128xi32>
    %4 = arith.extui %3 : vector<16x128xi1> to vector<16x128xi32>
    %5 = arith.sitofp %4 : vector<16x128xi32> to vector<16x128xf32>
    %c0_1 = arith.constant 0 : index
    %c0_2 = arith.constant 0 : index
    %6 = vector.load %arg2[%c0_1, %c0_2] : memref<776x128xf32, #tpu.memory_space<vmem>>, vector<128x128xf32>
    %cst = arith.constant dense<0.000000e+00> : vector<16x128xf32>
    %7 = tpu.matmul %5, %6, %cst {dimension_numbers = #tpu.dot_dimension_numbers<[1], [0], [0], [1], [0, 0, 1, 1], [], []>} : vector<16x128xf32>, vector<128x128xf32>, vector<16x128xf32> -> vector<16x128xf32>
    %c128 = arith.constant 128 : index
    %c0_3 = arith.constant 0 : index
    %8 = vector.load %arg2[%c128, %c0_3] : memref<776x128xf32, #tpu.memory_space<vmem>>, vector<8x128xf32>
    %9 = tpu.concatenate %8, %8 in 0 : vector<8x128xf32>, vector<8x128xf32> -> vector<16x128xf32>
    %10 = arith.addf %7, %9 : vector<16x128xf32>
    %11 = tpu.iota {dimensions = array<i32: 0>} : vector<8x8xi32>
    %12 = tpu.iota {dimensions = array<i32: 1>} : vector<8x8xi32>
    %13 = arith.cmpi sge, %11, %12 : vector<8x8xi32>
    %cst_4 = arith.constant 0.000000e+00 : f32
    %cst_5 = arith.constant -1.000000e+30 : f32
    %14 = vector.broadcast %cst_4 : f32 to vector<8x8xf32>
    %15 = vector.broadcast %cst_5 : f32 to vector<8x8xf32>
    %16 = arith.select %13, %14, %15 : vector<8x8xi1>, vector<8x8xf32>
    %c136 = arith.constant 136 : index
    %c0_6 = arith.constant 0 : index
    %17 = vector.load %arg2[%c136, %c0_6] : memref<776x128xf32, #tpu.memory_space<vmem>>, vector<128x128xf32>
    %c264 = arith.constant 264 : index
    %c0_7 = arith.constant 0 : index
    %18 = vector.load %arg2[%c264, %c0_7] : memref<776x128xf32, #tpu.memory_space<vmem>>, vector<32x128xf32>
    %c296 = arith.constant 296 : index
    %c0_8 = arith.constant 0 : index
    %19 = vector.load %arg2[%c296, %c0_8] : memref<776x128xf32, #tpu.memory_space<vmem>>, vector<1x128xf32>
    %cst_9 = arith.constant dense<0.000000e+00> : vector<16x128xf32>
    %20 = tpu.matmul %10, %17, %cst_9 {dimension_numbers = #tpu.dot_dimension_numbers<[1], [0], [0], [1], [0, 0, 1, 1], [], []>} : vector<16x128xf32>, vector<128x128xf32>, vector<16x128xf32> -> vector<16x128xf32>
    %21 = vector.extract_strided_slice %20 {offsets = [0, 0], sizes = [8, 8], strides = [1, 1]} : vector<16x128xf32> to vector<8x8xf32>
    %22 = vector.extract_strided_slice %20 {offsets = [0, 32], sizes = [8, 8], strides = [1, 1]} : vector<16x128xf32> to vector<8x8xf32>
    %23 = vector.extract_strided_slice %20 {offsets = [0, 64], sizes = [8, 8], strides = [1, 1]} : vector<16x128xf32> to vector<8x8xf32>
    %cst_10 = arith.constant dense<0.000000e+00> : vector<8x8xf32>
    %24 = tpu.matmul %21, %22, %cst_10 {dimension_numbers = #tpu.dot_dimension_numbers<[1], [1], [0], [0], [0, 0, 1, 0], [], []>} : vector<8x8xf32>, vector<8x8xf32>, vector<8x8xf32> -> vector<8x8xf32>
    %25 = arith.addf %24, %16 : vector<8x8xf32>
    %cst_11 = arith.constant dense<0xFF800000> : vector<8xf32>
    %26 = vector.multi_reduction <maximumf>, %25, %cst_11 [1] : vector<8x8xf32> to vector<8xf32>
    %27 = vector.shape_cast %26 : vector<8xf32> to vector<8x1xf32>
    %28 = vector.broadcast %27 : vector<8x1xf32> to vector<8x8xf32>
    %29 = arith.subf %25, %28 : vector<8x8xf32>
    %30 = math.exp %29 : vector<8x8xf32>
    %cst_12 = arith.constant dense<0.000000e+00> : vector<8xf32>
    %31 = vector.multi_reduction <add>, %30, %cst_12 [1] : vector<8x8xf32> to vector<8xf32>
    %32 = vector.shape_cast %31 : vector<8xf32> to vector<8x1xf32>
    %33 = tpu.reciprocal %32 {approx = true} : vector<8x1xf32> -> vector<8x1xf32>
    %34 = vector.broadcast %33 : vector<8x1xf32> to vector<8x8xf32>
    %35 = arith.mulf %30, %34 : vector<8x8xf32>
    %cst_13 = arith.constant dense<0.000000e+00> : vector<8x8xf32>
    %36 = tpu.matmul %35, %23, %cst_13 {dimension_numbers = #tpu.dot_dimension_numbers<[1], [0], [0], [1], [0, 0, 1, 1], [], []>} : vector<8x8xf32>, vector<8x8xf32>, vector<8x8xf32> -> vector<8x8xf32>
    %37 = vector.extract_strided_slice %20 {offsets = [0, 8], sizes = [8, 8], strides = [1, 1]} : vector<16x128xf32> to vector<8x8xf32>
    %38 = vector.extract_strided_slice %20 {offsets = [0, 40], sizes = [8, 8], strides = [1, 1]} : vector<16x128xf32> to vector<8x8xf32>
    %39 = vector.extract_strided_slice %20 {offsets = [0, 72], sizes = [8, 8], strides = [1, 1]} : vector<16x128xf32> to vector<8x8xf32>
    %cst_14 = arith.constant dense<0.000000e+00> : vector<8x8xf32>
    %40 = tpu.matmul %37, %38, %cst_14 {dimension_numbers = #tpu.dot_dimension_numbers<[1], [1], [0], [0], [0, 0, 1, 0], [], []>} : vector<8x8xf32>, vector<8x8xf32>, vector<8x8xf32> -> vector<8x8xf32>
    %41 = arith.addf %40, %16 : vector<8x8xf32>
    %cst_15 = arith.constant dense<0xFF800000> : vector<8xf32>
    %42 = vector.multi_reduction <maximumf>, %41, %cst_15 [1] : vector<8x8xf32> to vector<8xf32>
    %43 = vector.shape_cast %42 : vector<8xf32> to vector<8x1xf32>
    %44 = vector.broadcast %43 : vector<8x1xf32> to vector<8x8xf32>
    %45 = arith.subf %41, %44 : vector<8x8xf32>
    %46 = math.exp %45 : vector<8x8xf32>
    %cst_16 = arith.constant dense<0.000000e+00> : vector<8xf32>
    %47 = vector.multi_reduction <add>, %46, %cst_16 [1] : vector<8x8xf32> to vector<8xf32>
    %48 = vector.shape_cast %47 : vector<8xf32> to vector<8x1xf32>
    %49 = tpu.reciprocal %48 {approx = true} : vector<8x1xf32> -> vector<8x1xf32>
    %50 = vector.broadcast %49 : vector<8x1xf32> to vector<8x8xf32>
    %51 = arith.mulf %46, %50 : vector<8x8xf32>
    %cst_17 = arith.constant dense<0.000000e+00> : vector<8x8xf32>
    %52 = tpu.matmul %51, %39, %cst_17 {dimension_numbers = #tpu.dot_dimension_numbers<[1], [0], [0], [1], [0, 0, 1, 1], [], []>} : vector<8x8xf32>, vector<8x8xf32>, vector<8x8xf32> -> vector<8x8xf32>
    %53 = vector.extract_strided_slice %20 {offsets = [0, 16], sizes = [8, 8], strides = [1, 1]} : vector<16x128xf32> to vector<8x8xf32>
    %54 = vector.extract_strided_slice %20 {offsets = [0, 48], sizes = [8, 8], strides = [1, 1]} : vector<16x128xf32> to vector<8x8xf32>
    %55 = vector.extract_strided_slice %20 {offsets = [0, 80], sizes = [8, 8], strides = [1, 1]} : vector<16x128xf32> to vector<8x8xf32>
    %cst_18 = arith.constant dense<0.000000e+00> : vector<8x8xf32>
    %56 = tpu.matmul %53, %54, %cst_18 {dimension_numbers = #tpu.dot_dimension_numbers<[1], [1], [0], [0], [0, 0, 1, 0], [], []>} : vector<8x8xf32>, vector<8x8xf32>, vector<8x8xf32> -> vector<8x8xf32>
    %57 = arith.addf %56, %16 : vector<8x8xf32>
    %cst_19 = arith.constant dense<0xFF800000> : vector<8xf32>
    %58 = vector.multi_reduction <maximumf>, %57, %cst_19 [1] : vector<8x8xf32> to vector<8xf32>
    %59 = vector.shape_cast %58 : vector<8xf32> to vector<8x1xf32>
    %60 = vector.broadcast %59 : vector<8x1xf32> to vector<8x8xf32>
    %61 = arith.subf %57, %60 : vector<8x8xf32>
    %62 = math.exp %61 : vector<8x8xf32>
    %cst_20 = arith.constant dense<0.000000e+00> : vector<8xf32>
    %63 = vector.multi_reduction <add>, %62, %cst_20 [1] : vector<8x8xf32> to vector<8xf32>
    %64 = vector.shape_cast %63 : vector<8xf32> to vector<8x1xf32>
    %65 = tpu.reciprocal %64 {approx = true} : vector<8x1xf32> -> vector<8x1xf32>
    %66 = vector.broadcast %65 : vector<8x1xf32> to vector<8x8xf32>
    %67 = arith.mulf %62, %66 : vector<8x8xf32>
    %cst_21 = arith.constant dense<0.000000e+00> : vector<8x8xf32>
    %68 = tpu.matmul %67, %55, %cst_21 {dimension_numbers = #tpu.dot_dimension_numbers<[1], [0], [0], [1], [0, 0, 1, 1], [], []>} : vector<8x8xf32>, vector<8x8xf32>, vector<8x8xf32> -> vector<8x8xf32>
    %69 = vector.extract_strided_slice %20 {offsets = [0, 24], sizes = [8, 8], strides = [1, 1]} : vector<16x128xf32> to vector<8x8xf32>
    %70 = vector.extract_strided_slice %20 {offsets = [0, 56], sizes = [8, 8], strides = [1, 1]} : vector<16x128xf32> to vector<8x8xf32>
    %71 = vector.extract_strided_slice %20 {offsets = [0, 88], sizes = [8, 8], strides = [1, 1]} : vector<16x128xf32> to vector<8x8xf32>
    %cst_22 = arith.constant dense<0.000000e+00> : vector<8x8xf32>
    %72 = tpu.matmul %69, %70, %cst_22 {dimension_numbers = #tpu.dot_dimension_numbers<[1], [1], [0], [0], [0, 0, 1, 0], [], []>} : vector<8x8xf32>, vector<8x8xf32>, vector<8x8xf32> -> vector<8x8xf32>
    %73 = arith.addf %72, %16 : vector<8x8xf32>
    %cst_23 = arith.constant dense<0xFF800000> : vector<8xf32>
    %74 = vector.multi_reduction <maximumf>, %73, %cst_23 [1] : vector<8x8xf32> to vector<8xf32>
    %75 = vector.shape_cast %74 : vector<8xf32> to vector<8x1xf32>
    %76 = vector.broadcast %75 : vector<8x1xf32> to vector<8x8xf32>
    %77 = arith.subf %73, %76 : vector<8x8xf32>
    %78 = math.exp %77 : vector<8x8xf32>
    %cst_24 = arith.constant dense<0.000000e+00> : vector<8xf32>
    %79 = vector.multi_reduction <add>, %78, %cst_24 [1] : vector<8x8xf32> to vector<8xf32>
    %80 = vector.shape_cast %79 : vector<8xf32> to vector<8x1xf32>
    %81 = tpu.reciprocal %80 {approx = true} : vector<8x1xf32> -> vector<8x1xf32>
    %82 = vector.broadcast %81 : vector<8x1xf32> to vector<8x8xf32>
    %83 = arith.mulf %78, %82 : vector<8x8xf32>
    %cst_25 = arith.constant dense<0.000000e+00> : vector<8x8xf32>
    %84 = tpu.matmul %83, %71, %cst_25 {dimension_numbers = #tpu.dot_dimension_numbers<[1], [0], [0], [1], [0, 0, 1, 1], [], []>} : vector<8x8xf32>, vector<8x8xf32>, vector<8x8xf32> -> vector<8x8xf32>
    %85 = tpu.concatenate %36, %52, %68, %84 in 1 : vector<8x8xf32>, vector<8x8xf32>, vector<8x8xf32>, vector<8x8xf32> -> vector<8x32xf32>
    %86 = vector.extract_strided_slice %20 {offsets = [8, 0], sizes = [8, 8], strides = [1, 1]} : vector<16x128xf32> to vector<8x8xf32>
    %87 = vector.extract_strided_slice %20 {offsets = [8, 32], sizes = [8, 8], strides = [1, 1]} : vector<16x128xf32> to vector<8x8xf32>
    %88 = vector.extract_strided_slice %20 {offsets = [8, 64], sizes = [8, 8], strides = [1, 1]} : vector<16x128xf32> to vector<8x8xf32>
    %cst_26 = arith.constant dense<0.000000e+00> : vector<8x8xf32>
    %89 = tpu.matmul %86, %87, %cst_26 {dimension_numbers = #tpu.dot_dimension_numbers<[1], [1], [0], [0], [0, 0, 1, 0], [], []>} : vector<8x8xf32>, vector<8x8xf32>, vector<8x8xf32> -> vector<8x8xf32>
    %90 = arith.addf %89, %16 : vector<8x8xf32>
    %cst_27 = arith.constant dense<0xFF800000> : vector<8xf32>
    %91 = vector.multi_reduction <maximumf>, %90, %cst_27 [1] : vector<8x8xf32> to vector<8xf32>
    %92 = vector.shape_cast %91 : vector<8xf32> to vector<8x1xf32>
    %93 = vector.broadcast %92 : vector<8x1xf32> to vector<8x8xf32>
    %94 = arith.subf %90, %93 : vector<8x8xf32>
    %95 = math.exp %94 : vector<8x8xf32>
    %cst_28 = arith.constant dense<0.000000e+00> : vector<8xf32>
    %96 = vector.multi_reduction <add>, %95, %cst_28 [1] : vector<8x8xf32> to vector<8xf32>
    %97 = vector.shape_cast %96 : vector<8xf32> to vector<8x1xf32>
    %98 = tpu.reciprocal %97 {approx = true} : vector<8x1xf32> -> vector<8x1xf32>
    %99 = vector.broadcast %98 : vector<8x1xf32> to vector<8x8xf32>
    %100 = arith.mulf %95, %99 : vector<8x8xf32>
    %cst_29 = arith.constant dense<0.000000e+00> : vector<8x8xf32>
    %101 = tpu.matmul %100, %88, %cst_29 {dimension_numbers = #tpu.dot_dimension_numbers<[1], [0], [0], [1], [0, 0, 1, 1], [], []>} : vector<8x8xf32>, vector<8x8xf32>, vector<8x8xf32> -> vector<8x8xf32>
    %102 = vector.extract_strided_slice %20 {offsets = [8, 8], sizes = [8, 8], strides = [1, 1]} : vector<16x128xf32> to vector<8x8xf32>
    %103 = vector.extract_strided_slice %20 {offsets = [8, 40], sizes = [8, 8], strides = [1, 1]} : vector<16x128xf32> to vector<8x8xf32>
    %104 = vector.extract_strided_slice %20 {offsets = [8, 72], sizes = [8, 8], strides = [1, 1]} : vector<16x128xf32> to vector<8x8xf32>
    %cst_30 = arith.constant dense<0.000000e+00> : vector<8x8xf32>
    %105 = tpu.matmul %102, %103, %cst_30 {dimension_numbers = #tpu.dot_dimension_numbers<[1], [1], [0], [0], [0, 0, 1, 0], [], []>} : vector<8x8xf32>, vector<8x8xf32>, vector<8x8xf32> -> vector<8x8xf32>
    %106 = arith.addf %105, %16 : vector<8x8xf32>
    %cst_31 = arith.constant dense<0xFF800000> : vector<8xf32>
    %107 = vector.multi_reduction <maximumf>, %106, %cst_31 [1] : vector<8x8xf32> to vector<8xf32>
    %108 = vector.shape_cast %107 : vector<8xf32> to vector<8x1xf32>
    %109 = vector.broadcast %108 : vector<8x1xf32> to vector<8x8xf32>
    %110 = arith.subf %106, %109 : vector<8x8xf32>
    %111 = math.exp %110 : vector<8x8xf32>
    %cst_32 = arith.constant dense<0.000000e+00> : vector<8xf32>
    %112 = vector.multi_reduction <add>, %111, %cst_32 [1] : vector<8x8xf32> to vector<8xf32>
    %113 = vector.shape_cast %112 : vector<8xf32> to vector<8x1xf32>
    %114 = tpu.reciprocal %113 {approx = true} : vector<8x1xf32> -> vector<8x1xf32>
    %115 = vector.broadcast %114 : vector<8x1xf32> to vector<8x8xf32>
    %116 = arith.mulf %111, %115 : vector<8x8xf32>
    %cst_33 = arith.constant dense<0.000000e+00> : vector<8x8xf32>
    %117 = tpu.matmul %116, %104, %cst_33 {dimension_numbers = #tpu.dot_dimension_numbers<[1], [0], [0], [1], [0, 0, 1, 1], [], []>} : vector<8x8xf32>, vector<8x8xf32>, vector<8x8xf32> -> vector<8x8xf32>
    %118 = vector.extract_strided_slice %20 {offsets = [8, 16], sizes = [8, 8], strides = [1, 1]} : vector<16x128xf32> to vector<8x8xf32>
    %119 = vector.extract_strided_slice %20 {offsets = [8, 48], sizes = [8, 8], strides = [1, 1]} : vector<16x128xf32> to vector<8x8xf32>
    %120 = vector.extract_strided_slice %20 {offsets = [8, 80], sizes = [8, 8], strides = [1, 1]} : vector<16x128xf32> to vector<8x8xf32>
    %cst_34 = arith.constant dense<0.000000e+00> : vector<8x8xf32>
    %121 = tpu.matmul %118, %119, %cst_34 {dimension_numbers = #tpu.dot_dimension_numbers<[1], [1], [0], [0], [0, 0, 1, 0], [], []>} : vector<8x8xf32>, vector<8x8xf32>, vector<8x8xf32> -> vector<8x8xf32>
    %122 = arith.addf %121, %16 : vector<8x8xf32>
    %cst_35 = arith.constant dense<0xFF800000> : vector<8xf32>
    %123 = vector.multi_reduction <maximumf>, %122, %cst_35 [1] : vector<8x8xf32> to vector<8xf32>
    %124 = vector.shape_cast %123 : vector<8xf32> to vector<8x1xf32>
    %125 = vector.broadcast %124 : vector<8x1xf32> to vector<8x8xf32>
    %126 = arith.subf %122, %125 : vector<8x8xf32>
    %127 = math.exp %126 : vector<8x8xf32>
    %cst_36 = arith.constant dense<0.000000e+00> : vector<8xf32>
    %128 = vector.multi_reduction <add>, %127, %cst_36 [1] : vector<8x8xf32> to vector<8xf32>
    %129 = vector.shape_cast %128 : vector<8xf32> to vector<8x1xf32>
    %130 = tpu.reciprocal %129 {approx = true} : vector<8x1xf32> -> vector<8x1xf32>
    %131 = vector.broadcast %130 : vector<8x1xf32> to vector<8x8xf32>
    %132 = arith.mulf %127, %131 : vector<8x8xf32>
    %cst_37 = arith.constant dense<0.000000e+00> : vector<8x8xf32>
    %133 = tpu.matmul %132, %120, %cst_37 {dimension_numbers = #tpu.dot_dimension_numbers<[1], [0], [0], [1], [0, 0, 1, 1], [], []>} : vector<8x8xf32>, vector<8x8xf32>, vector<8x8xf32> -> vector<8x8xf32>
    %134 = vector.extract_strided_slice %20 {offsets = [8, 24], sizes = [8, 8], strides = [1, 1]} : vector<16x128xf32> to vector<8x8xf32>
    %135 = vector.extract_strided_slice %20 {offsets = [8, 56], sizes = [8, 8], strides = [1, 1]} : vector<16x128xf32> to vector<8x8xf32>
    %136 = vector.extract_strided_slice %20 {offsets = [8, 88], sizes = [8, 8], strides = [1, 1]} : vector<16x128xf32> to vector<8x8xf32>
    %cst_38 = arith.constant dense<0.000000e+00> : vector<8x8xf32>
    %137 = tpu.matmul %134, %135, %cst_38 {dimension_numbers = #tpu.dot_dimension_numbers<[1], [1], [0], [0], [0, 0, 1, 0], [], []>} : vector<8x8xf32>, vector<8x8xf32>, vector<8x8xf32> -> vector<8x8xf32>
    %138 = arith.addf %137, %16 : vector<8x8xf32>
    %cst_39 = arith.constant dense<0xFF800000> : vector<8xf32>
    %139 = vector.multi_reduction <maximumf>, %138, %cst_39 [1] : vector<8x8xf32> to vector<8xf32>
    %140 = vector.shape_cast %139 : vector<8xf32> to vector<8x1xf32>
    %141 = vector.broadcast %140 : vector<8x1xf32> to vector<8x8xf32>
    %142 = arith.subf %138, %141 : vector<8x8xf32>
    %143 = math.exp %142 : vector<8x8xf32>
    %cst_40 = arith.constant dense<0.000000e+00> : vector<8xf32>
    %144 = vector.multi_reduction <add>, %143, %cst_40 [1] : vector<8x8xf32> to vector<8xf32>
    %145 = vector.shape_cast %144 : vector<8xf32> to vector<8x1xf32>
    %146 = tpu.reciprocal %145 {approx = true} : vector<8x1xf32> -> vector<8x1xf32>
    %147 = vector.broadcast %146 : vector<8x1xf32> to vector<8x8xf32>
    %148 = arith.mulf %143, %147 : vector<8x8xf32>
    %cst_41 = arith.constant dense<0.000000e+00> : vector<8x8xf32>
    %149 = tpu.matmul %148, %136, %cst_41 {dimension_numbers = #tpu.dot_dimension_numbers<[1], [0], [0], [1], [0, 0, 1, 1], [], []>} : vector<8x8xf32>, vector<8x8xf32>, vector<8x8xf32> -> vector<8x8xf32>
    %150 = tpu.concatenate %101, %117, %133, %149 in 1 : vector<8x8xf32>, vector<8x8xf32>, vector<8x8xf32>, vector<8x8xf32> -> vector<8x32xf32>
    %151 = tpu.concatenate %85, %150 in 0 : vector<8x32xf32>, vector<8x32xf32> -> vector<16x32xf32>
    %cst_42 = arith.constant dense<0.000000e+00> : vector<16x128xf32>
    %152 = tpu.matmul %151, %18, %cst_42 {dimension_numbers = #tpu.dot_dimension_numbers<[1], [0], [0], [1], [0, 0, 1, 1], [], []>} : vector<16x32xf32>, vector<32x128xf32>, vector<16x128xf32> -> vector<16x128xf32>
    %153 = vector.broadcast %19 : vector<1x128xf32> to vector<16x128xf32>
    %154 = arith.addf %152, %153 : vector<16x128xf32>
    %cst_43 = arith.constant 5.000000e-01 : f32
    %155 = vector.broadcast %cst_43 : f32 to vector<16x128xf32>
    %156 = arith.mulf %155, %154 : vector<16x128xf32>
    %cst_44 = arith.constant 0.707106769 : f32
    %157 = vector.broadcast %cst_44 : f32 to vector<16x128xf32>
    %158 = arith.mulf %154, %157 : vector<16x128xf32>
    %159 = math.erf %158 : vector<16x128xf32>
    %cst_45 = arith.constant 1.000000e+00 : f32
    %160 = vector.broadcast %cst_45 : f32 to vector<16x128xf32>
    %161 = arith.addf %160, %159 : vector<16x128xf32>
    %162 = arith.mulf %156, %161 : vector<16x128xf32>
    %c304 = arith.constant 304 : index
    %c0_46 = arith.constant 0 : index
    %163 = vector.load %arg2[%c304, %c0_46] : memref<776x128xf32, #tpu.memory_space<vmem>>, vector<128x128xf32>
    %c432 = arith.constant 432 : index
    %c0_47 = arith.constant 0 : index
    %164 = vector.load %arg2[%c432, %c0_47] : memref<776x128xf32, #tpu.memory_space<vmem>>, vector<32x128xf32>
    %c464 = arith.constant 464 : index
    %c0_48 = arith.constant 0 : index
    %165 = vector.load %arg2[%c464, %c0_48] : memref<776x128xf32, #tpu.memory_space<vmem>>, vector<1x128xf32>
    %cst_49 = arith.constant dense<0.000000e+00> : vector<16x128xf32>
    %166 = tpu.matmul %162, %163, %cst_49 {dimension_numbers = #tpu.dot_dimension_numbers<[1], [0], [0], [1], [0, 0, 1, 1], [], []>} : vector<16x128xf32>, vector<128x128xf32>, vector<16x128xf32> -> vector<16x128xf32>
    %167 = vector.extract_strided_slice %166 {offsets = [0, 0], sizes = [8, 8], strides = [1, 1]} : vector<16x128xf32> to vector<8x8xf32>
    %168 = vector.extract_strided_slice %166 {offsets = [0, 32], sizes = [8, 8], strides = [1, 1]} : vector<16x128xf32> to vector<8x8xf32>
    %169 = vector.extract_strided_slice %166 {offsets = [0, 64], sizes = [8, 8], strides = [1, 1]} : vector<16x128xf32> to vector<8x8xf32>
    %cst_50 = arith.constant dense<0.000000e+00> : vector<8x8xf32>
    %170 = tpu.matmul %167, %168, %cst_50 {dimension_numbers = #tpu.dot_dimension_numbers<[1], [1], [0], [0], [0, 0, 1, 0], [], []>} : vector<8x8xf32>, vector<8x8xf32>, vector<8x8xf32> -> vector<8x8xf32>
    %171 = arith.addf %170, %16 : vector<8x8xf32>
    %cst_51 = arith.constant dense<0xFF800000> : vector<8xf32>
    %172 = vector.multi_reduction <maximumf>, %171, %cst_51 [1] : vector<8x8xf32> to vector<8xf32>
    %173 = vector.shape_cast %172 : vector<8xf32> to vector<8x1xf32>
    %174 = vector.broadcast %173 : vector<8x1xf32> to vector<8x8xf32>
    %175 = arith.subf %171, %174 : vector<8x8xf32>
    %176 = math.exp %175 : vector<8x8xf32>
    %cst_52 = arith.constant dense<0.000000e+00> : vector<8xf32>
    %177 = vector.multi_reduction <add>, %176, %cst_52 [1] : vector<8x8xf32> to vector<8xf32>
    %178 = vector.shape_cast %177 : vector<8xf32> to vector<8x1xf32>
    %179 = tpu.reciprocal %178 {approx = true} : vector<8x1xf32> -> vector<8x1xf32>
    %180 = vector.broadcast %179 : vector<8x1xf32> to vector<8x8xf32>
    %181 = arith.mulf %176, %180 : vector<8x8xf32>
    %cst_53 = arith.constant dense<0.000000e+00> : vector<8x8xf32>
    %182 = tpu.matmul %181, %169, %cst_53 {dimension_numbers = #tpu.dot_dimension_numbers<[1], [0], [0], [1], [0, 0, 1, 1], [], []>} : vector<8x8xf32>, vector<8x8xf32>, vector<8x8xf32> -> vector<8x8xf32>
    %183 = vector.extract_strided_slice %166 {offsets = [0, 8], sizes = [8, 8], strides = [1, 1]} : vector<16x128xf32> to vector<8x8xf32>
    %184 = vector.extract_strided_slice %166 {offsets = [0, 40], sizes = [8, 8], strides = [1, 1]} : vector<16x128xf32> to vector<8x8xf32>
    %185 = vector.extract_strided_slice %166 {offsets = [0, 72], sizes = [8, 8], strides = [1, 1]} : vector<16x128xf32> to vector<8x8xf32>
    %cst_54 = arith.constant dense<0.000000e+00> : vector<8x8xf32>
    %186 = tpu.matmul %183, %184, %cst_54 {dimension_numbers = #tpu.dot_dimension_numbers<[1], [1], [0], [0], [0, 0, 1, 0], [], []>} : vector<8x8xf32>, vector<8x8xf32>, vector<8x8xf32> -> vector<8x8xf32>
    %187 = arith.addf %186, %16 : vector<8x8xf32>
    %cst_55 = arith.constant dense<0xFF800000> : vector<8xf32>
    %188 = vector.multi_reduction <maximumf>, %187, %cst_55 [1] : vector<8x8xf32> to vector<8xf32>
    %189 = vector.shape_cast %188 : vector<8xf32> to vector<8x1xf32>
    %190 = vector.broadcast %189 : vector<8x1xf32> to vector<8x8xf32>
    %191 = arith.subf %187, %190 : vector<8x8xf32>
    %192 = math.exp %191 : vector<8x8xf32>
    %cst_56 = arith.constant dense<0.000000e+00> : vector<8xf32>
    %193 = vector.multi_reduction <add>, %192, %cst_56 [1] : vector<8x8xf32> to vector<8xf32>
    %194 = vector.shape_cast %193 : vector<8xf32> to vector<8x1xf32>
    %195 = tpu.reciprocal %194 {approx = true} : vector<8x1xf32> -> vector<8x1xf32>
    %196 = vector.broadcast %195 : vector<8x1xf32> to vector<8x8xf32>
    %197 = arith.mulf %192, %196 : vector<8x8xf32>
    %cst_57 = arith.constant dense<0.000000e+00> : vector<8x8xf32>
    %198 = tpu.matmul %197, %185, %cst_57 {dimension_numbers = #tpu.dot_dimension_numbers<[1], [0], [0], [1], [0, 0, 1, 1], [], []>} : vector<8x8xf32>, vector<8x8xf32>, vector<8x8xf32> -> vector<8x8xf32>
    %199 = vector.extract_strided_slice %166 {offsets = [0, 16], sizes = [8, 8], strides = [1, 1]} : vector<16x128xf32> to vector<8x8xf32>
    %200 = vector.extract_strided_slice %166 {offsets = [0, 48], sizes = [8, 8], strides = [1, 1]} : vector<16x128xf32> to vector<8x8xf32>
    %201 = vector.extract_strided_slice %166 {offsets = [0, 80], sizes = [8, 8], strides = [1, 1]} : vector<16x128xf32> to vector<8x8xf32>
    %cst_58 = arith.constant dense<0.000000e+00> : vector<8x8xf32>
    %202 = tpu.matmul %199, %200, %cst_58 {dimension_numbers = #tpu.dot_dimension_numbers<[1], [1], [0], [0], [0, 0, 1, 0], [], []>} : vector<8x8xf32>, vector<8x8xf32>, vector<8x8xf32> -> vector<8x8xf32>
    %203 = arith.addf %202, %16 : vector<8x8xf32>
    %cst_59 = arith.constant dense<0xFF800000> : vector<8xf32>
    %204 = vector.multi_reduction <maximumf>, %203, %cst_59 [1] : vector<8x8xf32> to vector<8xf32>
    %205 = vector.shape_cast %204 : vector<8xf32> to vector<8x1xf32>
    %206 = vector.broadcast %205 : vector<8x1xf32> to vector<8x8xf32>
    %207 = arith.subf %203, %206 : vector<8x8xf32>
    %208 = math.exp %207 : vector<8x8xf32>
    %cst_60 = arith.constant dense<0.000000e+00> : vector<8xf32>
    %209 = vector.multi_reduction <add>, %208, %cst_60 [1] : vector<8x8xf32> to vector<8xf32>
    %210 = vector.shape_cast %209 : vector<8xf32> to vector<8x1xf32>
    %211 = tpu.reciprocal %210 {approx = true} : vector<8x1xf32> -> vector<8x1xf32>
    %212 = vector.broadcast %211 : vector<8x1xf32> to vector<8x8xf32>
    %213 = arith.mulf %208, %212 : vector<8x8xf32>
    %cst_61 = arith.constant dense<0.000000e+00> : vector<8x8xf32>
    %214 = tpu.matmul %213, %201, %cst_61 {dimension_numbers = #tpu.dot_dimension_numbers<[1], [0], [0], [1], [0, 0, 1, 1], [], []>} : vector<8x8xf32>, vector<8x8xf32>, vector<8x8xf32> -> vector<8x8xf32>
    %215 = vector.extract_strided_slice %166 {offsets = [0, 24], sizes = [8, 8], strides = [1, 1]} : vector<16x128xf32> to vector<8x8xf32>
    %216 = vector.extract_strided_slice %166 {offsets = [0, 56], sizes = [8, 8], strides = [1, 1]} : vector<16x128xf32> to vector<8x8xf32>
    %217 = vector.extract_strided_slice %166 {offsets = [0, 88], sizes = [8, 8], strides = [1, 1]} : vector<16x128xf32> to vector<8x8xf32>
    %cst_62 = arith.constant dense<0.000000e+00> : vector<8x8xf32>
    %218 = tpu.matmul %215, %216, %cst_62 {dimension_numbers = #tpu.dot_dimension_numbers<[1], [1], [0], [0], [0, 0, 1, 0], [], []>} : vector<8x8xf32>, vector<8x8xf32>, vector<8x8xf32> -> vector<8x8xf32>
    %219 = arith.addf %218, %16 : vector<8x8xf32>
    %cst_63 = arith.constant dense<0xFF800000> : vector<8xf32>
    %220 = vector.multi_reduction <maximumf>, %219, %cst_63 [1] : vector<8x8xf32> to vector<8xf32>
    %221 = vector.shape_cast %220 : vector<8xf32> to vector<8x1xf32>
    %222 = vector.broadcast %221 : vector<8x1xf32> to vector<8x8xf32>
    %223 = arith.subf %219, %222 : vector<8x8xf32>
    %224 = math.exp %223 : vector<8x8xf32>
    %cst_64 = arith.constant dense<0.000000e+00> : vector<8xf32>
    %225 = vector.multi_reduction <add>, %224, %cst_64 [1] : vector<8x8xf32> to vector<8xf32>
    %226 = vector.shape_cast %225 : vector<8xf32> to vector<8x1xf32>
    %227 = tpu.reciprocal %226 {approx = true} : vector<8x1xf32> -> vector<8x1xf32>
    %228 = vector.broadcast %227 : vector<8x1xf32> to vector<8x8xf32>
    %229 = arith.mulf %224, %228 : vector<8x8xf32>
    %cst_65 = arith.constant dense<0.000000e+00> : vector<8x8xf32>
    %230 = tpu.matmul %229, %217, %cst_65 {dimension_numbers = #tpu.dot_dimension_numbers<[1], [0], [0], [1], [0, 0, 1, 1], [], []>} : vector<8x8xf32>, vector<8x8xf32>, vector<8x8xf32> -> vector<8x8xf32>
    %231 = tpu.concatenate %182, %198, %214, %230 in 1 : vector<8x8xf32>, vector<8x8xf32>, vector<8x8xf32>, vector<8x8xf32> -> vector<8x32xf32>
    %232 = vector.extract_strided_slice %166 {offsets = [8, 0], sizes = [8, 8], strides = [1, 1]} : vector<16x128xf32> to vector<8x8xf32>
    %233 = vector.extract_strided_slice %166 {offsets = [8, 32], sizes = [8, 8], strides = [1, 1]} : vector<16x128xf32> to vector<8x8xf32>
    %234 = vector.extract_strided_slice %166 {offsets = [8, 64], sizes = [8, 8], strides = [1, 1]} : vector<16x128xf32> to vector<8x8xf32>
    %cst_66 = arith.constant dense<0.000000e+00> : vector<8x8xf32>
    %235 = tpu.matmul %232, %233, %cst_66 {dimension_numbers = #tpu.dot_dimension_numbers<[1], [1], [0], [0], [0, 0, 1, 0], [], []>} : vector<8x8xf32>, vector<8x8xf32>, vector<8x8xf32> -> vector<8x8xf32>
    %236 = arith.addf %235, %16 : vector<8x8xf32>
    %cst_67 = arith.constant dense<0xFF800000> : vector<8xf32>
    %237 = vector.multi_reduction <maximumf>, %236, %cst_67 [1] : vector<8x8xf32> to vector<8xf32>
    %238 = vector.shape_cast %237 : vector<8xf32> to vector<8x1xf32>
    %239 = vector.broadcast %238 : vector<8x1xf32> to vector<8x8xf32>
    %240 = arith.subf %236, %239 : vector<8x8xf32>
    %241 = math.exp %240 : vector<8x8xf32>
    %cst_68 = arith.constant dense<0.000000e+00> : vector<8xf32>
    %242 = vector.multi_reduction <add>, %241, %cst_68 [1] : vector<8x8xf32> to vector<8xf32>
    %243 = vector.shape_cast %242 : vector<8xf32> to vector<8x1xf32>
    %244 = tpu.reciprocal %243 {approx = true} : vector<8x1xf32> -> vector<8x1xf32>
    %245 = vector.broadcast %244 : vector<8x1xf32> to vector<8x8xf32>
    %246 = arith.mulf %241, %245 : vector<8x8xf32>
    %cst_69 = arith.constant dense<0.000000e+00> : vector<8x8xf32>
    %247 = tpu.matmul %246, %234, %cst_69 {dimension_numbers = #tpu.dot_dimension_numbers<[1], [0], [0], [1], [0, 0, 1, 1], [], []>} : vector<8x8xf32>, vector<8x8xf32>, vector<8x8xf32> -> vector<8x8xf32>
    %248 = vector.extract_strided_slice %166 {offsets = [8, 8], sizes = [8, 8], strides = [1, 1]} : vector<16x128xf32> to vector<8x8xf32>
    %249 = vector.extract_strided_slice %166 {offsets = [8, 40], sizes = [8, 8], strides = [1, 1]} : vector<16x128xf32> to vector<8x8xf32>
    %250 = vector.extract_strided_slice %166 {offsets = [8, 72], sizes = [8, 8], strides = [1, 1]} : vector<16x128xf32> to vector<8x8xf32>
    %cst_70 = arith.constant dense<0.000000e+00> : vector<8x8xf32>
    %251 = tpu.matmul %248, %249, %cst_70 {dimension_numbers = #tpu.dot_dimension_numbers<[1], [1], [0], [0], [0, 0, 1, 0], [], []>} : vector<8x8xf32>, vector<8x8xf32>, vector<8x8xf32> -> vector<8x8xf32>
    %252 = arith.addf %251, %16 : vector<8x8xf32>
    %cst_71 = arith.constant dense<0xFF800000> : vector<8xf32>
    %253 = vector.multi_reduction <maximumf>, %252, %cst_71 [1] : vector<8x8xf32> to vector<8xf32>
    %254 = vector.shape_cast %253 : vector<8xf32> to vector<8x1xf32>
    %255 = vector.broadcast %254 : vector<8x1xf32> to vector<8x8xf32>
    %256 = arith.subf %252, %255 : vector<8x8xf32>
    %257 = math.exp %256 : vector<8x8xf32>
    %cst_72 = arith.constant dense<0.000000e+00> : vector<8xf32>
    %258 = vector.multi_reduction <add>, %257, %cst_72 [1] : vector<8x8xf32> to vector<8xf32>
    %259 = vector.shape_cast %258 : vector<8xf32> to vector<8x1xf32>
    %260 = tpu.reciprocal %259 {approx = true} : vector<8x1xf32> -> vector<8x1xf32>
    %261 = vector.broadcast %260 : vector<8x1xf32> to vector<8x8xf32>
    %262 = arith.mulf %257, %261 : vector<8x8xf32>
    %cst_73 = arith.constant dense<0.000000e+00> : vector<8x8xf32>
    %263 = tpu.matmul %262, %250, %cst_73 {dimension_numbers = #tpu.dot_dimension_numbers<[1], [0], [0], [1], [0, 0, 1, 1], [], []>} : vector<8x8xf32>, vector<8x8xf32>, vector<8x8xf32> -> vector<8x8xf32>
    %264 = vector.extract_strided_slice %166 {offsets = [8, 16], sizes = [8, 8], strides = [1, 1]} : vector<16x128xf32> to vector<8x8xf32>
    %265 = vector.extract_strided_slice %166 {offsets = [8, 48], sizes = [8, 8], strides = [1, 1]} : vector<16x128xf32> to vector<8x8xf32>
    %266 = vector.extract_strided_slice %166 {offsets = [8, 80], sizes = [8, 8], strides = [1, 1]} : vector<16x128xf32> to vector<8x8xf32>
    %cst_74 = arith.constant dense<0.000000e+00> : vector<8x8xf32>
    %267 = tpu.matmul %264, %265, %cst_74 {dimension_numbers = #tpu.dot_dimension_numbers<[1], [1], [0], [0], [0, 0, 1, 0], [], []>} : vector<8x8xf32>, vector<8x8xf32>, vector<8x8xf32> -> vector<8x8xf32>
    %268 = arith.addf %267, %16 : vector<8x8xf32>
    %cst_75 = arith.constant dense<0xFF800000> : vector<8xf32>
    %269 = vector.multi_reduction <maximumf>, %268, %cst_75 [1] : vector<8x8xf32> to vector<8xf32>
    %270 = vector.shape_cast %269 : vector<8xf32> to vector<8x1xf32>
    %271 = vector.broadcast %270 : vector<8x1xf32> to vector<8x8xf32>
    %272 = arith.subf %268, %271 : vector<8x8xf32>
    %273 = math.exp %272 : vector<8x8xf32>
    %cst_76 = arith.constant dense<0.000000e+00> : vector<8xf32>
    %274 = vector.multi_reduction <add>, %273, %cst_76 [1] : vector<8x8xf32> to vector<8xf32>
    %275 = vector.shape_cast %274 : vector<8xf32> to vector<8x1xf32>
    %276 = tpu.reciprocal %275 {approx = true} : vector<8x1xf32> -> vector<8x1xf32>
    %277 = vector.broadcast %276 : vector<8x1xf32> to vector<8x8xf32>
    %278 = arith.mulf %273, %277 : vector<8x8xf32>
    %cst_77 = arith.constant dense<0.000000e+00> : vector<8x8xf32>
    %279 = tpu.matmul %278, %266, %cst_77 {dimension_numbers = #tpu.dot_dimension_numbers<[1], [0], [0], [1], [0, 0, 1, 1], [], []>} : vector<8x8xf32>, vector<8x8xf32>, vector<8x8xf32> -> vector<8x8xf32>
    %280 = vector.extract_strided_slice %166 {offsets = [8, 24], sizes = [8, 8], strides = [1, 1]} : vector<16x128xf32> to vector<8x8xf32>
    %281 = vector.extract_strided_slice %166 {offsets = [8, 56], sizes = [8, 8], strides = [1, 1]} : vector<16x128xf32> to vector<8x8xf32>
    %282 = vector.extract_strided_slice %166 {offsets = [8, 88], sizes = [8, 8], strides = [1, 1]} : vector<16x128xf32> to vector<8x8xf32>
    %cst_78 = arith.constant dense<0.000000e+00> : vector<8x8xf32>
    %283 = tpu.matmul %280, %281, %cst_78 {dimension_numbers = #tpu.dot_dimension_numbers<[1], [1], [0], [0], [0, 0, 1, 0], [], []>} : vector<8x8xf32>, vector<8x8xf32>, vector<8x8xf32> -> vector<8x8xf32>
    %284 = arith.addf %283, %16 : vector<8x8xf32>
    %cst_79 = arith.constant dense<0xFF800000> : vector<8xf32>
    %285 = vector.multi_reduction <maximumf>, %284, %cst_79 [1] : vector<8x8xf32> to vector<8xf32>
    %286 = vector.shape_cast %285 : vector<8xf32> to vector<8x1xf32>
    %287 = vector.broadcast %286 : vector<8x1xf32> to vector<8x8xf32>
    %288 = arith.subf %284, %287 : vector<8x8xf32>
    %289 = math.exp %288 : vector<8x8xf32>
    %cst_80 = arith.constant dense<0.000000e+00> : vector<8xf32>
    %290 = vector.multi_reduction <add>, %289, %cst_80 [1] : vector<8x8xf32> to vector<8xf32>
    %291 = vector.shape_cast %290 : vector<8xf32> to vector<8x1xf32>
    %292 = tpu.reciprocal %291 {approx = true} : vector<8x1xf32> -> vector<8x1xf32>
    %293 = vector.broadcast %292 : vector<8x1xf32> to vector<8x8xf32>
    %294 = arith.mulf %289, %293 : vector<8x8xf32>
    %cst_81 = arith.constant dense<0.000000e+00> : vector<8x8xf32>
    %295 = tpu.matmul %294, %282, %cst_81 {dimension_numbers = #tpu.dot_dimension_numbers<[1], [0], [0], [1], [0, 0, 1, 1], [], []>} : vector<8x8xf32>, vector<8x8xf32>, vector<8x8xf32> -> vector<8x8xf32>
    %296 = tpu.concatenate %247, %263, %279, %295 in 1 : vector<8x8xf32>, vector<8x8xf32>, vector<8x8xf32>, vector<8x8xf32> -> vector<8x32xf32>
    %297 = tpu.concatenate %231, %296 in 0 : vector<8x32xf32>, vector<8x32xf32> -> vector<16x32xf32>
    %cst_82 = arith.constant dense<0.000000e+00> : vector<16x128xf32>
    %298 = tpu.matmul %297, %164, %cst_82 {dimension_numbers = #tpu.dot_dimension_numbers<[1], [0], [0], [1], [0, 0, 1, 1], [], []>} : vector<16x32xf32>, vector<32x128xf32>, vector<16x128xf32> -> vector<16x128xf32>
    %299 = vector.broadcast %165 : vector<1x128xf32> to vector<16x128xf32>
    %300 = arith.addf %298, %299 : vector<16x128xf32>
    %cst_83 = arith.constant 5.000000e-01 : f32
    %301 = vector.broadcast %cst_83 : f32 to vector<16x128xf32>
    %302 = arith.mulf %301, %300 : vector<16x128xf32>
    %cst_84 = arith.constant 0.707106769 : f32
    %303 = vector.broadcast %cst_84 : f32 to vector<16x128xf32>
    %304 = arith.mulf %300, %303 : vector<16x128xf32>
    %305 = math.erf %304 : vector<16x128xf32>
    %cst_85 = arith.constant 1.000000e+00 : f32
    %306 = vector.broadcast %cst_85 : f32 to vector<16x128xf32>
    %307 = arith.addf %306, %305 : vector<16x128xf32>
    %308 = arith.mulf %302, %307 : vector<16x128xf32>
    %c472 = arith.constant 472 : index
    %c0_86 = arith.constant 0 : index
    %309 = vector.load %arg2[%c472, %c0_86] : memref<776x128xf32, #tpu.memory_space<vmem>>, vector<128x128xf32>
    %c600 = arith.constant 600 : index
    %c0_87 = arith.constant 0 : index
    %310 = vector.load %arg2[%c600, %c0_87] : memref<776x128xf32, #tpu.memory_space<vmem>>, vector<32x128xf32>
    %c632 = arith.constant 632 : index
    %c0_88 = arith.constant 0 : index
    %311 = vector.load %arg2[%c632, %c0_88] : memref<776x128xf32, #tpu.memory_space<vmem>>, vector<1x128xf32>
    %cst_89 = arith.constant dense<0.000000e+00> : vector<16x128xf32>
    %312 = tpu.matmul %308, %309, %cst_89 {dimension_numbers = #tpu.dot_dimension_numbers<[1], [0], [0], [1], [0, 0, 1, 1], [], []>} : vector<16x128xf32>, vector<128x128xf32>, vector<16x128xf32> -> vector<16x128xf32>
    %313 = vector.extract_strided_slice %312 {offsets = [0, 0], sizes = [8, 8], strides = [1, 1]} : vector<16x128xf32> to vector<8x8xf32>
    %314 = vector.extract_strided_slice %312 {offsets = [0, 32], sizes = [8, 8], strides = [1, 1]} : vector<16x128xf32> to vector<8x8xf32>
    %315 = vector.extract_strided_slice %312 {offsets = [0, 64], sizes = [8, 8], strides = [1, 1]} : vector<16x128xf32> to vector<8x8xf32>
    %cst_90 = arith.constant dense<0.000000e+00> : vector<8x8xf32>
    %316 = tpu.matmul %313, %314, %cst_90 {dimension_numbers = #tpu.dot_dimension_numbers<[1], [1], [0], [0], [0, 0, 1, 0], [], []>} : vector<8x8xf32>, vector<8x8xf32>, vector<8x8xf32> -> vector<8x8xf32>
    %317 = arith.addf %316, %16 : vector<8x8xf32>
    %cst_91 = arith.constant dense<0xFF800000> : vector<8xf32>
    %318 = vector.multi_reduction <maximumf>, %317, %cst_91 [1] : vector<8x8xf32> to vector<8xf32>
    %319 = vector.shape_cast %318 : vector<8xf32> to vector<8x1xf32>
    %320 = vector.broadcast %319 : vector<8x1xf32> to vector<8x8xf32>
    %321 = arith.subf %317, %320 : vector<8x8xf32>
    %322 = math.exp %321 : vector<8x8xf32>
    %cst_92 = arith.constant dense<0.000000e+00> : vector<8xf32>
    %323 = vector.multi_reduction <add>, %322, %cst_92 [1] : vector<8x8xf32> to vector<8xf32>
    %324 = vector.shape_cast %323 : vector<8xf32> to vector<8x1xf32>
    %325 = tpu.reciprocal %324 {approx = true} : vector<8x1xf32> -> vector<8x1xf32>
    %326 = vector.broadcast %325 : vector<8x1xf32> to vector<8x8xf32>
    %327 = arith.mulf %322, %326 : vector<8x8xf32>
    %cst_93 = arith.constant dense<0.000000e+00> : vector<8x8xf32>
    %328 = tpu.matmul %327, %315, %cst_93 {dimension_numbers = #tpu.dot_dimension_numbers<[1], [0], [0], [1], [0, 0, 1, 1], [], []>} : vector<8x8xf32>, vector<8x8xf32>, vector<8x8xf32> -> vector<8x8xf32>
    %329 = vector.extract_strided_slice %312 {offsets = [0, 8], sizes = [8, 8], strides = [1, 1]} : vector<16x128xf32> to vector<8x8xf32>
    %330 = vector.extract_strided_slice %312 {offsets = [0, 40], sizes = [8, 8], strides = [1, 1]} : vector<16x128xf32> to vector<8x8xf32>
    %331 = vector.extract_strided_slice %312 {offsets = [0, 72], sizes = [8, 8], strides = [1, 1]} : vector<16x128xf32> to vector<8x8xf32>
    %cst_94 = arith.constant dense<0.000000e+00> : vector<8x8xf32>
    %332 = tpu.matmul %329, %330, %cst_94 {dimension_numbers = #tpu.dot_dimension_numbers<[1], [1], [0], [0], [0, 0, 1, 0], [], []>} : vector<8x8xf32>, vector<8x8xf32>, vector<8x8xf32> -> vector<8x8xf32>
    %333 = arith.addf %332, %16 : vector<8x8xf32>
    %cst_95 = arith.constant dense<0xFF800000> : vector<8xf32>
    %334 = vector.multi_reduction <maximumf>, %333, %cst_95 [1] : vector<8x8xf32> to vector<8xf32>
    %335 = vector.shape_cast %334 : vector<8xf32> to vector<8x1xf32>
    %336 = vector.broadcast %335 : vector<8x1xf32> to vector<8x8xf32>
    %337 = arith.subf %333, %336 : vector<8x8xf32>
    %338 = math.exp %337 : vector<8x8xf32>
    %cst_96 = arith.constant dense<0.000000e+00> : vector<8xf32>
    %339 = vector.multi_reduction <add>, %338, %cst_96 [1] : vector<8x8xf32> to vector<8xf32>
    %340 = vector.shape_cast %339 : vector<8xf32> to vector<8x1xf32>
    %341 = tpu.reciprocal %340 {approx = true} : vector<8x1xf32> -> vector<8x1xf32>
    %342 = vector.broadcast %341 : vector<8x1xf32> to vector<8x8xf32>
    %343 = arith.mulf %338, %342 : vector<8x8xf32>
    %cst_97 = arith.constant dense<0.000000e+00> : vector<8x8xf32>
    %344 = tpu.matmul %343, %331, %cst_97 {dimension_numbers = #tpu.dot_dimension_numbers<[1], [0], [0], [1], [0, 0, 1, 1], [], []>} : vector<8x8xf32>, vector<8x8xf32>, vector<8x8xf32> -> vector<8x8xf32>
    %345 = vector.extract_strided_slice %312 {offsets = [0, 16], sizes = [8, 8], strides = [1, 1]} : vector<16x128xf32> to vector<8x8xf32>
    %346 = vector.extract_strided_slice %312 {offsets = [0, 48], sizes = [8, 8], strides = [1, 1]} : vector<16x128xf32> to vector<8x8xf32>
    %347 = vector.extract_strided_slice %312 {offsets = [0, 80], sizes = [8, 8], strides = [1, 1]} : vector<16x128xf32> to vector<8x8xf32>
    %cst_98 = arith.constant dense<0.000000e+00> : vector<8x8xf32>
    %348 = tpu.matmul %345, %346, %cst_98 {dimension_numbers = #tpu.dot_dimension_numbers<[1], [1], [0], [0], [0, 0, 1, 0], [], []>} : vector<8x8xf32>, vector<8x8xf32>, vector<8x8xf32> -> vector<8x8xf32>
    %349 = arith.addf %348, %16 : vector<8x8xf32>
    %cst_99 = arith.constant dense<0xFF800000> : vector<8xf32>
    %350 = vector.multi_reduction <maximumf>, %349, %cst_99 [1] : vector<8x8xf32> to vector<8xf32>
    %351 = vector.shape_cast %350 : vector<8xf32> to vector<8x1xf32>
    %352 = vector.broadcast %351 : vector<8x1xf32> to vector<8x8xf32>
    %353 = arith.subf %349, %352 : vector<8x8xf32>
    %354 = math.exp %353 : vector<8x8xf32>
    %cst_100 = arith.constant dense<0.000000e+00> : vector<8xf32>
    %355 = vector.multi_reduction <add>, %354, %cst_100 [1] : vector<8x8xf32> to vector<8xf32>
    %356 = vector.shape_cast %355 : vector<8xf32> to vector<8x1xf32>
    %357 = tpu.reciprocal %356 {approx = true} : vector<8x1xf32> -> vector<8x1xf32>
    %358 = vector.broadcast %357 : vector<8x1xf32> to vector<8x8xf32>
    %359 = arith.mulf %354, %358 : vector<8x8xf32>
    %cst_101 = arith.constant dense<0.000000e+00> : vector<8x8xf32>
    %360 = tpu.matmul %359, %347, %cst_101 {dimension_numbers = #tpu.dot_dimension_numbers<[1], [0], [0], [1], [0, 0, 1, 1], [], []>} : vector<8x8xf32>, vector<8x8xf32>, vector<8x8xf32> -> vector<8x8xf32>
    %361 = vector.extract_strided_slice %312 {offsets = [0, 24], sizes = [8, 8], strides = [1, 1]} : vector<16x128xf32> to vector<8x8xf32>
    %362 = vector.extract_strided_slice %312 {offsets = [0, 56], sizes = [8, 8], strides = [1, 1]} : vector<16x128xf32> to vector<8x8xf32>
    %363 = vector.extract_strided_slice %312 {offsets = [0, 88], sizes = [8, 8], strides = [1, 1]} : vector<16x128xf32> to vector<8x8xf32>
    %cst_102 = arith.constant dense<0.000000e+00> : vector<8x8xf32>
    %364 = tpu.matmul %361, %362, %cst_102 {dimension_numbers = #tpu.dot_dimension_numbers<[1], [1], [0], [0], [0, 0, 1, 0], [], []>} : vector<8x8xf32>, vector<8x8xf32>, vector<8x8xf32> -> vector<8x8xf32>
    %365 = arith.addf %364, %16 : vector<8x8xf32>
    %cst_103 = arith.constant dense<0xFF800000> : vector<8xf32>
    %366 = vector.multi_reduction <maximumf>, %365, %cst_103 [1] : vector<8x8xf32> to vector<8xf32>
    %367 = vector.shape_cast %366 : vector<8xf32> to vector<8x1xf32>
    %368 = vector.broadcast %367 : vector<8x1xf32> to vector<8x8xf32>
    %369 = arith.subf %365, %368 : vector<8x8xf32>
    %370 = math.exp %369 : vector<8x8xf32>
    %cst_104 = arith.constant dense<0.000000e+00> : vector<8xf32>
    %371 = vector.multi_reduction <add>, %370, %cst_104 [1] : vector<8x8xf32> to vector<8xf32>
    %372 = vector.shape_cast %371 : vector<8xf32> to vector<8x1xf32>
    %373 = tpu.reciprocal %372 {approx = true} : vector<8x1xf32> -> vector<8x1xf32>
    %374 = vector.broadcast %373 : vector<8x1xf32> to vector<8x8xf32>
    %375 = arith.mulf %370, %374 : vector<8x8xf32>
    %cst_105 = arith.constant dense<0.000000e+00> : vector<8x8xf32>
    %376 = tpu.matmul %375, %363, %cst_105 {dimension_numbers = #tpu.dot_dimension_numbers<[1], [0], [0], [1], [0, 0, 1, 1], [], []>} : vector<8x8xf32>, vector<8x8xf32>, vector<8x8xf32> -> vector<8x8xf32>
    %377 = tpu.concatenate %328, %344, %360, %376 in 1 : vector<8x8xf32>, vector<8x8xf32>, vector<8x8xf32>, vector<8x8xf32> -> vector<8x32xf32>
    %378 = vector.extract_strided_slice %312 {offsets = [8, 0], sizes = [8, 8], strides = [1, 1]} : vector<16x128xf32> to vector<8x8xf32>
    %379 = vector.extract_strided_slice %312 {offsets = [8, 32], sizes = [8, 8], strides = [1, 1]} : vector<16x128xf32> to vector<8x8xf32>
    %380 = vector.extract_strided_slice %312 {offsets = [8, 64], sizes = [8, 8], strides = [1, 1]} : vector<16x128xf32> to vector<8x8xf32>
    %cst_106 = arith.constant dense<0.000000e+00> : vector<8x8xf32>
    %381 = tpu.matmul %378, %379, %cst_106 {dimension_numbers = #tpu.dot_dimension_numbers<[1], [1], [0], [0], [0, 0, 1, 0], [], []>} : vector<8x8xf32>, vector<8x8xf32>, vector<8x8xf32> -> vector<8x8xf32>
    %382 = arith.addf %381, %16 : vector<8x8xf32>
    %cst_107 = arith.constant dense<0xFF800000> : vector<8xf32>
    %383 = vector.multi_reduction <maximumf>, %382, %cst_107 [1] : vector<8x8xf32> to vector<8xf32>
    %384 = vector.shape_cast %383 : vector<8xf32> to vector<8x1xf32>
    %385 = vector.broadcast %384 : vector<8x1xf32> to vector<8x8xf32>
    %386 = arith.subf %382, %385 : vector<8x8xf32>
    %387 = math.exp %386 : vector<8x8xf32>
    %cst_108 = arith.constant dense<0.000000e+00> : vector<8xf32>
    %388 = vector.multi_reduction <add>, %387, %cst_108 [1] : vector<8x8xf32> to vector<8xf32>
    %389 = vector.shape_cast %388 : vector<8xf32> to vector<8x1xf32>
    %390 = tpu.reciprocal %389 {approx = true} : vector<8x1xf32> -> vector<8x1xf32>
    %391 = vector.broadcast %390 : vector<8x1xf32> to vector<8x8xf32>
    %392 = arith.mulf %387, %391 : vector<8x8xf32>
    %cst_109 = arith.constant dense<0.000000e+00> : vector<8x8xf32>
    %393 = tpu.matmul %392, %380, %cst_109 {dimension_numbers = #tpu.dot_dimension_numbers<[1], [0], [0], [1], [0, 0, 1, 1], [], []>} : vector<8x8xf32>, vector<8x8xf32>, vector<8x8xf32> -> vector<8x8xf32>
    %394 = vector.extract_strided_slice %312 {offsets = [8, 8], sizes = [8, 8], strides = [1, 1]} : vector<16x128xf32> to vector<8x8xf32>
    %395 = vector.extract_strided_slice %312 {offsets = [8, 40], sizes = [8, 8], strides = [1, 1]} : vector<16x128xf32> to vector<8x8xf32>
    %396 = vector.extract_strided_slice %312 {offsets = [8, 72], sizes = [8, 8], strides = [1, 1]} : vector<16x128xf32> to vector<8x8xf32>
    %cst_110 = arith.constant dense<0.000000e+00> : vector<8x8xf32>
    %397 = tpu.matmul %394, %395, %cst_110 {dimension_numbers = #tpu.dot_dimension_numbers<[1], [1], [0], [0], [0, 0, 1, 0], [], []>} : vector<8x8xf32>, vector<8x8xf32>, vector<8x8xf32> -> vector<8x8xf32>
    %398 = arith.addf %397, %16 : vector<8x8xf32>
    %cst_111 = arith.constant dense<0xFF800000> : vector<8xf32>
    %399 = vector.multi_reduction <maximumf>, %398, %cst_111 [1] : vector<8x8xf32> to vector<8xf32>
    %400 = vector.shape_cast %399 : vector<8xf32> to vector<8x1xf32>
    %401 = vector.broadcast %400 : vector<8x1xf32> to vector<8x8xf32>
    %402 = arith.subf %398, %401 : vector<8x8xf32>
    %403 = math.exp %402 : vector<8x8xf32>
    %cst_112 = arith.constant dense<0.000000e+00> : vector<8xf32>
    %404 = vector.multi_reduction <add>, %403, %cst_112 [1] : vector<8x8xf32> to vector<8xf32>
    %405 = vector.shape_cast %404 : vector<8xf32> to vector<8x1xf32>
    %406 = tpu.reciprocal %405 {approx = true} : vector<8x1xf32> -> vector<8x1xf32>
    %407 = vector.broadcast %406 : vector<8x1xf32> to vector<8x8xf32>
    %408 = arith.mulf %403, %407 : vector<8x8xf32>
    %cst_113 = arith.constant dense<0.000000e+00> : vector<8x8xf32>
    %409 = tpu.matmul %408, %396, %cst_113 {dimension_numbers = #tpu.dot_dimension_numbers<[1], [0], [0], [1], [0, 0, 1, 1], [], []>} : vector<8x8xf32>, vector<8x8xf32>, vector<8x8xf32> -> vector<8x8xf32>
    %410 = vector.extract_strided_slice %312 {offsets = [8, 16], sizes = [8, 8], strides = [1, 1]} : vector<16x128xf32> to vector<8x8xf32>
    %411 = vector.extract_strided_slice %312 {offsets = [8, 48], sizes = [8, 8], strides = [1, 1]} : vector<16x128xf32> to vector<8x8xf32>
    %412 = vector.extract_strided_slice %312 {offsets = [8, 80], sizes = [8, 8], strides = [1, 1]} : vector<16x128xf32> to vector<8x8xf32>
    %cst_114 = arith.constant dense<0.000000e+00> : vector<8x8xf32>
    %413 = tpu.matmul %410, %411, %cst_114 {dimension_numbers = #tpu.dot_dimension_numbers<[1], [1], [0], [0], [0, 0, 1, 0], [], []>} : vector<8x8xf32>, vector<8x8xf32>, vector<8x8xf32> -> vector<8x8xf32>
    %414 = arith.addf %413, %16 : vector<8x8xf32>
    %cst_115 = arith.constant dense<0xFF800000> : vector<8xf32>
    %415 = vector.multi_reduction <maximumf>, %414, %cst_115 [1] : vector<8x8xf32> to vector<8xf32>
    %416 = vector.shape_cast %415 : vector<8xf32> to vector<8x1xf32>
    %417 = vector.broadcast %416 : vector<8x1xf32> to vector<8x8xf32>
    %418 = arith.subf %414, %417 : vector<8x8xf32>
    %419 = math.exp %418 : vector<8x8xf32>
    %cst_116 = arith.constant dense<0.000000e+00> : vector<8xf32>
    %420 = vector.multi_reduction <add>, %419, %cst_116 [1] : vector<8x8xf32> to vector<8xf32>
    %421 = vector.shape_cast %420 : vector<8xf32> to vector<8x1xf32>
    %422 = tpu.reciprocal %421 {approx = true} : vector<8x1xf32> -> vector<8x1xf32>
    %423 = vector.broadcast %422 : vector<8x1xf32> to vector<8x8xf32>
    %424 = arith.mulf %419, %423 : vector<8x8xf32>
    %cst_117 = arith.constant dense<0.000000e+00> : vector<8x8xf32>
    %425 = tpu.matmul %424, %412, %cst_117 {dimension_numbers = #tpu.dot_dimension_numbers<[1], [0], [0], [1], [0, 0, 1, 1], [], []>} : vector<8x8xf32>, vector<8x8xf32>, vector<8x8xf32> -> vector<8x8xf32>
    %426 = vector.extract_strided_slice %312 {offsets = [8, 24], sizes = [8, 8], strides = [1, 1]} : vector<16x128xf32> to vector<8x8xf32>
    %427 = vector.extract_strided_slice %312 {offsets = [8, 56], sizes = [8, 8], strides = [1, 1]} : vector<16x128xf32> to vector<8x8xf32>
    %428 = vector.extract_strided_slice %312 {offsets = [8, 88], sizes = [8, 8], strides = [1, 1]} : vector<16x128xf32> to vector<8x8xf32>
    %cst_118 = arith.constant dense<0.000000e+00> : vector<8x8xf32>
    %429 = tpu.matmul %426, %427, %cst_118 {dimension_numbers = #tpu.dot_dimension_numbers<[1], [1], [0], [0], [0, 0, 1, 0], [], []>} : vector<8x8xf32>, vector<8x8xf32>, vector<8x8xf32> -> vector<8x8xf32>
    %430 = arith.addf %429, %16 : vector<8x8xf32>
    %cst_119 = arith.constant dense<0xFF800000> : vector<8xf32>
    %431 = vector.multi_reduction <maximumf>, %430, %cst_119 [1] : vector<8x8xf32> to vector<8xf32>
    %432 = vector.shape_cast %431 : vector<8xf32> to vector<8x1xf32>
    %433 = vector.broadcast %432 : vector<8x1xf32> to vector<8x8xf32>
    %434 = arith.subf %430, %433 : vector<8x8xf32>
    %435 = math.exp %434 : vector<8x8xf32>
    %cst_120 = arith.constant dense<0.000000e+00> : vector<8xf32>
    %436 = vector.multi_reduction <add>, %435, %cst_120 [1] : vector<8x8xf32> to vector<8xf32>
    %437 = vector.shape_cast %436 : vector<8xf32> to vector<8x1xf32>
    %438 = tpu.reciprocal %437 {approx = true} : vector<8x1xf32> -> vector<8x1xf32>
    %439 = vector.broadcast %438 : vector<8x1xf32> to vector<8x8xf32>
    %440 = arith.mulf %435, %439 : vector<8x8xf32>
    %cst_121 = arith.constant dense<0.000000e+00> : vector<8x8xf32>
    %441 = tpu.matmul %440, %428, %cst_121 {dimension_numbers = #tpu.dot_dimension_numbers<[1], [0], [0], [1], [0, 0, 1, 1], [], []>} : vector<8x8xf32>, vector<8x8xf32>, vector<8x8xf32> -> vector<8x8xf32>
    %442 = tpu.concatenate %393, %409, %425, %441 in 1 : vector<8x8xf32>, vector<8x8xf32>, vector<8x8xf32>, vector<8x8xf32> -> vector<8x32xf32>
    %443 = tpu.concatenate %377, %442 in 0 : vector<8x32xf32>, vector<8x32xf32> -> vector<16x32xf32>
    %cst_122 = arith.constant dense<0.000000e+00> : vector<16x128xf32>
    %444 = tpu.matmul %443, %310, %cst_122 {dimension_numbers = #tpu.dot_dimension_numbers<[1], [0], [0], [1], [0, 0, 1, 1], [], []>} : vector<16x32xf32>, vector<32x128xf32>, vector<16x128xf32> -> vector<16x128xf32>
    %445 = vector.broadcast %311 : vector<1x128xf32> to vector<16x128xf32>
    %446 = arith.addf %444, %445 : vector<16x128xf32>
    %cst_123 = arith.constant 5.000000e-01 : f32
    %447 = vector.broadcast %cst_123 : f32 to vector<16x128xf32>
    %448 = arith.mulf %447, %446 : vector<16x128xf32>
    %cst_124 = arith.constant 0.707106769 : f32
    %449 = vector.broadcast %cst_124 : f32 to vector<16x128xf32>
    %450 = arith.mulf %446, %449 : vector<16x128xf32>
    %451 = math.erf %450 : vector<16x128xf32>
    %cst_125 = arith.constant 1.000000e+00 : f32
    %452 = vector.broadcast %cst_125 : f32 to vector<16x128xf32>
    %453 = arith.addf %452, %451 : vector<16x128xf32>
    %454 = arith.mulf %448, %453 : vector<16x128xf32>
    %c640 = arith.constant 640 : index
    %c0_126 = arith.constant 0 : index
    %455 = vector.load %arg2[%c640, %c0_126] : memref<776x128xf32, #tpu.memory_space<vmem>>, vector<128x128xf32>
    %c768 = arith.constant 768 : index
    %c0_127 = arith.constant 0 : index
    %456 = vector.load %arg2[%c768, %c0_127] : memref<776x128xf32, #tpu.memory_space<vmem>>, vector<1x128xf32>
    %cst_128 = arith.constant dense<0.000000e+00> : vector<16x128xf32>
    %457 = tpu.matmul %454, %455, %cst_128 {dimension_numbers = #tpu.dot_dimension_numbers<[1], [0], [0], [1], [0, 0, 1, 1], [], []>} : vector<16x128xf32>, vector<128x128xf32>, vector<16x128xf32> -> vector<16x128xf32>
    %458 = vector.broadcast %456 : vector<1x128xf32> to vector<16x128xf32>
    %459 = arith.addf %457, %458 : vector<16x128xf32>
    %c0_129 = arith.constant 0 : index
    %c0_130 = arith.constant 0 : index
    %460 = vector.load %arg3[%c0_129, %c0_130] : memref<16x128xf32, #tpu.memory_space<vmem>>, vector<16x128xf32>
    tpu.vector_store %arg3[%c0_129, %c0_130], %459 {strides = array<i32>} : memref<16x128xf32, #tpu.memory_space<vmem>>, vector<16x128xf32>,
    return
  }
  func.func @transform_0(%arg0: i32) -> (i32, i32) {
    %c0_i32 = arith.constant 0 : i32
    %c0_i32_0 = arith.constant 0 : i32
    %c0_i32_1 = arith.constant 0 : i32
    return %c0_i32, %c0_i32_0 : i32, i32
  }
  func.func @transform_1(%arg0: i32) -> (i32, i32) {
    %c0_i32 = arith.constant 0 : i32
    %c0_i32_0 = arith.constant 0 : i32
    %c0_i32_1 = arith.constant 0 : i32
    return %c0_i32, %c0_i32_0 : i32, i32
  }
  func.func @transform_2(%arg0: i32) -> (i32, i32) {
    %c0_i32 = arith.constant 0 : i32
    %c0_i32_0 = arith.constant 0 : i32
    %c0_i32_1 = arith.constant 0 : i32
    return %c0_i32, %c0_i32_0 : i32, i32
  }
}

</mosaic_0001>

<bundles_post_ra>
// kernel: bigram_forward.1
= control target key start
LH: loop header
LB: loop body
LE: loop exit
PB: predicated region body
PF: predicated region fallthrough
CT: control target
= control target key end

     0   :  { %7 = vsyncpa [#allocation3], 0  ;;  %s5751_s9 = smov [#allocation2]   ;;  %s6312_s0 = inlined_call_operand.vmem [shape: s32[16,1], index: 0, kind: input, shape index: {}]   ;;  %s6313_s1 = inlined_call_operand.hbm [shape: f32[776,128], index: 1, kind: input, shape index: {}]   ;;  %s6314_s2 = inlined_call_operand.vmem [shape: f32[16,128], index: 2, kind: output, shape index: {}]  }
   0x1   :  { %s15_s10 = sshll.u32 %s5751_s9, 4  ;;  %s16_s10 = int_to_ptr.vmem [resolvable:$true] %s15_s10 }
   0x2   :  { %s5737_s11 = scalar_lea.vmem %s16_s10, 12416  ;;  %p5742_p1 = scmp.lt.s32.totalorder %s16_s10, %s16_s10 }
   0x3   :  { %p5738_p0 = scmp.ne.s32.totalorder %s16_s10, %s5737_s11  ;;  %p5743_p2 = scmp.lt.s32.totalorder %s5737_s11, %s5737_s11 }
   0x5   :  { %p5744_p3 = por %p5743_p2, %p5742_p1 }
   0x7   :  { %p5745_p4 = pnand %p5744_p3, %p5738_p0 }
   0x9   :  { %5748 = shalt.err (!%p5745_p4)
}
   0xa   :  { %s5752_s12 = smov 128   ;;  %s5753_s13 = smov 8  }
   0xb   :  { %21 = dma.hbm_to_vmem [thread:$0]  %s6313_s1, 12416, %s16_s10, [#allocation3], %s5752_s12, %s5752_s12, %s5753_s13  }
   0xc   :  { %5749 = dma.done.wait [#allocation3], 12416  }
   0xd   :  { %5750 = vsyncadd [#allocation3], 4294954880  ;;  %v5754_v0 = vmov 0   ;;  %v25_v1 = vld [vmem:[%s6312_s0] sm:$0xff]  ;;  %v56_v2 = vld [vmem:[#allocation2 + $0x78] sm:$0xff]  ;;  %v27_v32 = vlaneseq  ;;  %v5755_v35 = vmov 1.0  }
   0xe   :  { %5620 = vset.pattern.permute.xlu0 %v5754_v0  ;;  %5151 = vmatprep.subr.mxu0 %v56_v2  ;;  %v55_v3 = vld [vmem:[#allocation2 + $0x70] sm:$0xff]  ;;  %v26_v4 = vld [vmem:[%s6312_s0 + $0x8] sm:$0xff]  ;;  %v53_v6 = vld [vmem:[#allocation2 + $0x60] sm:$0xff]  ;;  %v5756_v45 = vmov 0.0   ;;  %vm5757_vm2 = vmmov 0   ;;  %s5758_s0 = smov 96  }
   0xf   :  { %30 = vperm.xlu0 %5620, %v25_v1   ;;  %5152 = vmatpush3.msra.mxu0 %v56_v2  ;;  %v54_v5 = vld [vmem:[#allocation2 + $0x68] sm:$0xff]  ;;  %v52_v7 = vld [vmem:[#allocation2 + $0x58] sm:$0xff]  ;;  %v152_v8 = vld [vmem:[#allocation2 + $0x100] sm:$0xff]  ;;  %v28_v33 = vand.u32 127, %v27_v32  ;;  %vm236_vm3 = vcmask 64512   ;;  %v134_v49 = vshrl.u32 %v27_v32, 7 }
  0x10   :  { %5153 = vmatprep.subr.mxu0 %v55_v3  ;;  %v151_v9 = vld [vmem:[#allocation2 + $0xf8] sm:$0xff]  ;;  %5186 = vmatprep.subr.mxu1 %v152_v8  ;;  %v51_v10 = vld [vmem:[#allocation2 + $0x50] sm:$0xff]  ;;  %v50_v12 = vld [vmem:[#allocation2 + $0x48] sm:$0xff]  ;;  %v5759_v50 = vmov -1e+30   ;;  %s5760_s1 = smov 88  }
  0x11   :  { %5154 = vmatpush3.msra.mxu0 %v55_v3  ;;  %5187 = vmatpush3.msra.mxu1 %v152_v8  ;;  %v150_v11 = vld [vmem:[#allocation2 + $0xf0] sm:$0xff]  ;;  %v149_v13 = vld [vmem:[#allocation2 + $0xe8] sm:$0xff]  ;;  %v49_v14 = vld [vmem:[#allocation2 + $0x40] sm:$0xff]  ;;  %vm135_vm4 = vcmp.ge.s32.totalorder %v134_v49, %v28_v33  ;;  %s5761_s20 = smov 120   ;;  %s5762_s21 = smov 64   ;;  %vm906_vm5 = vcmask 130048  }
  0x12   :  { %5155 = vmatprep.subr.mxu0 %v54_v5  ;;  %5188 = vmatprep.subr.mxu1 %v151_v9  ;;  %v148_v15 = vld [vmem:[#allocation2 + $0xe0] sm:$0xff]  ;;  %v48_v16 = vld [vmem:[#allocation2 + $0x38] sm:$0xff]  ;;  %v47_v18 = vld [vmem:[#allocation2 + $0x30] sm:$0xff]  ;;  %v5815_v51 = vsel %vm135_vm4, 0.0, %v5759_v50  ;;  %s5763_s22 = smov 56   ;;  %s5764_s23 = smov 112  }
  0x13   :  { %33 = vperm.xlu0 %5620, %v26_v4   ;;  %5156 = vmatpush3.msra.mxu0 %v54_v5  ;;  %v147_v17 = vld [vmem:[#allocation2 + $0xd8] sm:$0xff]  ;;  %v146_v19 = vld [vmem:[#allocation2 + $0xd0] sm:$0xff]  ;;  %v46_v20 = vld [vmem:[#allocation2 + $0x28] sm:$0xff]  ;;  %s5765_s24 = smov 80   ;;  %s5766_s25 = smov 72   ;;  %vm908_vm6 = vcmask 195584  }
  0x14   :  { %5157 = vmatprep.subr.mxu0 %v53_v6  ;;  %5189 = vmatpush3.msra.mxu1 %v151_v9  ;;  %v145_v21 = vld [vmem:[#allocation2 + $0xc8] sm:$0xff]  ;;  %v45_v22 = vld [vmem:[#allocation2 + $0x20] sm:$0xff]  ;;  %v44_v24 = vld [vmem:[#allocation2 + $0x18] sm:$0xff]  ;;  %s5767_s26 = smov 104   ;;  %s5768_s27 = smov 48   ;;  %vm1588_vm7 = vcmask 261120  }
  0x15   :  { %5158 = vmatpush3.msra.mxu0 %v53_v6  ;;  %5190 = vmatprep.subr.mxu1 %v150_v11  ;;  %v144_v23 = vld [vmem:[#allocation2 + $0xc0] sm:$0xff]  ;;  %v143_v25 = vld [vmem:[#allocation2 + $0xb8] sm:$0xff]  ;;  %v43_v26 = vld [vmem:[#allocation2 + $0x10] sm:$0xff]  ;;  %s5769_s28 = smov 40   ;;  %s5770_s29 = smov 16  }
  0x16   :  { %5159 = vmatprep.subr.mxu0 %v52_v7  ;;  %5191 = vmatpush3.msra.mxu1 %v150_v11  ;;  %v142_v27 = vld [vmem:[#allocation2 + $0xb0] sm:$0xff]  ;;  %v42_v28 = vld [vmem:[#allocation2 + $0x8] sm:$0xff]  ;;  %v41_v30 = vld [vmem:[#allocation2] sm:$0xff]  ;;  %s5771_s30 = smov 24  }
  0x17   :  { %5160 = vmatpush3.msra.mxu0 %v52_v7  ;;  %5192 = vmatprep.subr.mxu1 %v149_v13  ;;  %v141_v29 = vld [vmem:[#allocation2 + $0xa8] sm:$0xff]  ;;  %v140_v31 = vld [vmem:[#allocation2 + $0xa0] sm:$0xff]  ;;  %v139_v37 = vld [vmem:[#allocation2 + $0x98] sm:$0xff] }
  0x18   :  { %5161 = vmatprep.subr.mxu0 %v51_v10  ;;  %5193 = vmatpush3.msra.mxu1 %v149_v13  ;;  %v138_v38 = vld [vmem:[#allocation2 + $0x90] sm:$0xff]  ;;  %v137_v39 = vld [vmem:[#allocation2 + $0x88] sm:$0xff]  ;;  %v57_v41 = vld [vmem:[#allocation2 + $0x80] sm:$0xff] }
  0x19   :  { %5162 = vmatpush3.msra.mxu0 %v51_v10  ;;  %5194 = vmatprep.subr.mxu1 %v148_v15 }
  0x1a   :  { %5163 = vmatprep.subr.mxu0 %v50_v12  ;;  %5195 = vmatpush3.msra.mxu1 %v148_v15 }
  0x1b   :  { %5164 = vmatpush3.msra.mxu0 %v50_v12  ;;  %5196 = vmatprep.subr.mxu1 %v147_v17 }
  0x1c   :  { %5165 = vmatprep.subr.mxu0 %v49_v14  ;;  %5197 = vmatpush3.msra.mxu1 %v147_v17 }
  0x1d   :  { %5166 = vmatpush3.msra.mxu0 %v49_v14  ;;  %5198 = vmatprep.subr.mxu1 %v146_v19 }
  0x1e   :  { %5167 = vmatprep.subr.mxu0 %v48_v16  ;;  %5199 = vmatpush3.msra.mxu1 %v146_v19 }
  0x1f   :  { %5168 = vmatpush3.msra.mxu0 %v48_v16  ;;  %5200 = vmatprep.subr.mxu1 %v145_v21 }
  0x20   :  { %5169 = vmatprep.subr.mxu0 %v47_v18  ;;  %5201 = vmatpush3.msra.mxu1 %v145_v21 }
  0x21   :  { %5170 = vmatpush3.msra.mxu0 %v47_v18  ;;  %5202 = vmatprep.subr.mxu1 %v144_v23 }
  0x22   :  { %5171 = vmatprep.subr.mxu0 %v46_v20  ;;  %5203 = vmatpush3.msra.mxu1 %v144_v23 }
  0x23   :  { %5172 = vmatpush3.msra.mxu0 %v46_v20  ;;  %5204 = vmatprep.subr.mxu1 %v143_v25 }
  0x24   :  { %5173 = vmatprep.subr.mxu0 %v45_v22  ;;  %5205 = vmatpush3.msra.mxu1 %v143_v25 }
  0x25   :  { %5174 = vmatpush3.msra.mxu0 %v45_v22  ;;  %5206 = vmatprep.subr.mxu1 %v142_v27 }
  0x26   :  { %5175 = vmatprep.subr.mxu0 %v44_v24  ;;  %5207 = vmatpush3.msra.mxu1 %v142_v27 }
  0x27   :  { %5176 = vmatpush3.msra.mxu0 %v44_v24  ;;  %5208 = vmatprep.subr.mxu1 %v141_v29 }
  0x28   :  { %5177 = vmatprep.subr.mxu0 %v43_v26  ;;  %5209 = vmatpush3.msra.mxu1 %v141_v29 }
  0x29   :  { %5178 = vmatpush3.msra.mxu0 %v43_v26  ;;  %5210 = vmatprep.subr.mxu1 %v140_v31 }
  0x2a   :  { %5179 = vmatprep.subr.mxu0 %v42_v28  ;;  %5211 = vmatpush3.msra.mxu1 %v140_v31 }
  0x2b   :  { %5180 = vmatpush3.msra.mxu0 %v42_v28  ;;  %5212 = vmatprep.subr.mxu1 %v139_v37 }
  0x2c   :  { %5181 = vmatprep.subr.mxu0 %v41_v30  ;;  %5213 = vmatpush3.msra.mxu1 %v139_v37 }
  0x2d   :  { %5182 = vmatpush3.msra.mxu0 %v41_v30  ;;  %5214 = vmatprep.subr.mxu1 %v138_v38 }
  0x2e   :  { %5215 = vmatpush3.msra.mxu1 %v138_v38  ;;  %5221 = vmatprep.subr.mxu0 %v5756_v45 }
  0x2f   :  { %5216 = vmatprep.subr.mxu1 %v137_v39 }
  0x30   :  { %5217 = vmatpush3.msra.mxu1 %v137_v39 }
  0x31   :  { %5256 = vmatprep.subr.mxu1 %v5756_v45 }
  0x8a   :  { %v31_v34 = vpop.permute.xlu0 %30 }
  0x8b   :  { %vm35_vm0 = vcmp.eq.s32.totalorder %v28_v33, %v31_v34 }
  0x8c   :  { %5183 = vmatprep.mubr.msk.f32.mxu0 %vm35_vm0, %v5755_v35 }
  0x8e   :  { %v34_v36 = vpop.permute.xlu0 %33 }
  0x8f   :  { %vm36_vm1 = vcmp.eq.s32.totalorder %v28_v33, %v34_v36 }
  0x90   :  { %5184 = vmatmul.mubr.msk.f32.vlgmr.msra.gmra.mxu0 %vm36_vm1, %v5755_v35 }
  0x91   :  { %5223 = vmatprep.mubr.msk.f32.mxu0 %vm5757_vm2, %v5756_v45 }
 0x150   :  { %v5185_v40 = vpop.f32.mrf.mxu0 }
 0x151   :  { %v130_v44 = vadd.f32 %v5185_v40, %v57_v41 }
 0x152   :  { %v124_v42 = vpop.f32.mrf.mxu0 }
 0x153   :  { %v125_v43 = vadd.f32 %v124_v42, %v57_v41 }
 0x155   :  { %5218 = vmatprep.mubr.f32.mxu1 %v125_v43 }
 0x156   :  { %5219 = vmatmul.mubr.f32.vlgmr.msra.gmra.mxu1 %v130_v44 }
 0x157   :  { %5258 = vmatprep.mubr.msk.f32.mxu1 %vm5757_vm2, %v5756_v45 }
 0x216   :  { %v5803_v46 = vpop.f32.mrf.mxu1 }
 0x218   :  { %v5805_v47 = vpop.f32.mrf.mxu1 }
 0x219   :  { %234 = vrot.lane.b32.xlu1 %v5805_v47, %s5758_s0 }
 0x28b   :  { %v235_v48 = vpop.permute.xlu1 %234 }
 0x28c   :  { %5222 = vmatpush3.xpose.msk.msra.mxu0 %vm236_vm3, %v235_v48 }
 0x28d   :  { %5226 = vmatprep.subr.mxu0 %v5756_v45 }
 0x28f   :  { %5224 = vmatmul.mubr.msk.f32.vlgmr.msra.gmra.mxu0 %vm236_vm3, %v5805_v47 }
 0x290   :  { %5228 = vmatprep.mubr.msk.f32.mxu0 %vm5757_vm2, %v5756_v45 }
 0x34f   :  { %v307_v52 = vpop.f32.mrf.mxu0 }
 0x350   :  { %v308_v53 = vadd.f32 %v307_v52, %v5815_v51 }
 0x351   :  { %v5225_v54 = vpop.f32.mrf.mxu0 }
 0x352   :  { %v311_v55 = vsel %vm236_vm3, %v308_v53, -inf }
 0x353   :  { %312 = vmax.xlane.f32.xlu1 %v311_v55 }
 0x364   :  { %400 = vrot.lane.b32.xlu1 %v5805_v47, %s5760_s1 }
 0x368   :  { %398 = vrot.lane.b32.xlu1 %v5805_v47, %s5761_s20 }
 0x3dc   :  { %v313_v56 = vpop.xlane.xlu1 %312 }
 0x3dd   :  { %v314_v57 = vsub.f32 %v308_v53, %v313_v56 }
 0x3df   :  { %v315_v58 = vmul.f32 1.442695, %v314_v57 }
 0x3e0   :  { %v401_v0 = vpop.permute.xlu1 %400 }
 0x3e1   :  { %5621 = vpow2.f32 %v315_v58 }
 0x3e4   :  { %v399_v2 = vpop.permute.xlu1 %398 }
 0x3ee   :  { %v5622_v59 = vpop.eup %5621 }
 0x3ef   :  { %v317_v60 = vsel %vm236_vm3, %v5622_v59, 0.0 }
 0x3f0   :  { %318 = vadd.xlane.f32.xlu0 %v317_v60 }
 0x406   :  { %322 = vrot.lane.b32.xlu0 %v5805_v47, %s5762_s21 }
 0x479   :  { %v319_v61 = vpop.xlane.xlu0 %318 }
 0x47a   :  { %5623 = vrcp.f32 %v319_v61 }
 0x47d   :  { %v323_v62 = vpop.permute.xlu0 %322 }
 0x47e   :  { %5227 = vmatpush3.msra.mxu0 %v323_v62 }
 0x47f   :  { %5231 = vmatprep.subr.mxu0 %v5756_v45 }
 0x487   :  { %v5624_v63 = vpop.eup %5623 }
 0x488   :  { %v321_v1 = vmul.f32 %v5624_v63, %v5622_v59 }
 0x48a   :  { %5229 = vmatmul.mubr.msk.f32.vlgmr.msra.gmra.mxu0 %vm236_vm3, %v321_v1 }
 0x48b   :  { %5232 = vmatpush3.xpose.msk.msra.mxu0 %vm236_vm3, %v401_v0  ;;  %5233 = vmatprep.mubr.msk.f32.mxu0 %vm5757_vm2, %v5756_v45 }
 0x48c   :  { %5236 = vmatprep.subr.mxu0 %v5756_v45 }
 0x48e   :  { %5234 = vmatmul.mubr.msk.f32.vlgmr.msra.gmra.mxu0 %vm236_vm3, %v399_v2 }
 0x48f   :  { %5238 = vmatprep.mubr.msk.f32.mxu0 %vm5757_vm2, %v5756_v45 }
 0x54a   :  { %v5835_v3 = vpop.f32.mrf.mxu0 }
 0x54c   :  { %v5230_v4 = vpop.f32.mrf.mxu0 }
 0x54e   :  { %v472_v5 = vpop.f32.mrf.mxu0 }
 0x54f   :  { %v473_v6 = vadd.f32 %v472_v5, %v5815_v51 }
 0x550   :  { %v5235_v7 = vpop.f32.mrf.mxu0 }
 0x551   :  { %v476_v8 = vsel %vm236_vm3, %v473_v6, -inf }
 0x552   :  { %477 = vmax.xlane.f32.xlu0 %v476_v8 }
 0x568   :  { %487 = vrot.lane.b32.xlu0 %v5805_v47, %s5763_s22 }
 0x56c   :  { %563 = vrot.lane.b32.xlu0 %v5805_v47, %s5764_s23 }
 0x5db   :  { %v478_v9 = vpop.xlane.xlu0 %477 }
 0x5dc   :  { %v479_v10 = vsub.f32 %v473_v6, %v478_v9 }
 0x5de   :  { %v480_v11 = vmul.f32 1.442695, %v479_v10 }
 0x5df   :  { %v488_v12 = vpop.permute.xlu0 %487 }
 0x5e0   :  { %5625 = vpow2.f32 %v480_v11  ;;  %5237 = vmatpush3.msra.mxu0 %v488_v12 }
 0x5e1   :  { %5241 = vmatprep.subr.mxu0 %v5756_v45 }
 0x5e3   :  { %v564_v19 = vpop.permute.xlu0 %563 }
 0x5ed   :  { %v5626_v13 = vpop.eup %5625 }
 0x5ee   :  { %v482_v14 = vsel %vm236_vm3, %v5626_v13, 0.0 }
 0x5ef   :  { %483 = vadd.xlane.f32.xlu1 %v482_v14 }
 0x600   :  { %565 = vrot.lane.b32.xlu1 %v5805_v47, %s5765_s24 }
 0x678   :  { %v484_v15 = vpop.xlane.xlu1 %483 }
 0x679   :  { %5627 = vrcp.f32 %v484_v15 }
 0x67c   :  { %v566_v18 = vpop.permute.xlu1 %565 }
 0x686   :  { %v5628_v16 = vpop.eup %5627 }
 0x687   :  { %v486_v17 = vmul.f32 %v5628_v16, %v5626_v13 }
 0x689   :  { %5239 = vmatmul.mubr.msk.f32.vlgmr.msra.gmra.mxu0 %vm236_vm3, %v486_v17 }
 0x68a   :  { %5242 = vmatpush3.xpose.msk.msra.mxu0 %vm236_vm3, %v566_v18  ;;  %5243 = vmatprep.mubr.msk.f32.mxu0 %vm5757_vm2, %v5756_v45 }
 0x68b   :  { %5246 = vmatprep.subr.mxu0 %v5756_v45 }
 0x68d   :  { %5244 = vmatmul.mubr.msk.f32.vlgmr.msra.gmra.mxu0 %vm236_vm3, %v564_v19 }
 0x68e   :  { %5248 = vmatprep.mubr.msk.f32.mxu0 %vm5757_vm2, %v5756_v45 }
 0x749   :  { %v5855_v20 = vpop.f32.mrf.mxu0 }
 0x74b   :  { %v5240_v21 = vpop.f32.mrf.mxu0 }
 0x74d   :  { %v637_v22 = vpop.f32.mrf.mxu0 }
 0x74e   :  { %v638_v23 = vadd.f32 %v637_v22, %v5815_v51 }
 0x74f   :  { %v5245_v24 = vpop.f32.mrf.mxu0 }
 0x750   :  { %v641_v25 = vsel %vm236_vm3, %v638_v23, -inf }
 0x751   :  { %642 = vmax.xlane.f32.xlu1 %v641_v25 }
 0x762   :  { %730 = vrot.lane.b32.xlu1 %v5805_v47, %s5766_s25 }
 0x766   :  { %728 = vrot.lane.b32.xlu1 %v5805_v47, %s5767_s26 }
 0x76a   :  { %1076 = vrot.lane.b32.xlu1 %v5803_v46, %s5760_s1 }
 0x76e   :  { %1241 = vrot.lane.b32.xlu1 %v5803_v46, %s5765_s24 }
 0x772   :  { %1406 = vrot.lane.b32.xlu1 %v5803_v46, %s5766_s25 }
 0x7da   :  { %v643_v26 = vpop.xlane.xlu1 %642 }
 0x7db   :  { %v644_v27 = vsub.f32 %v638_v23, %v643_v26 }
 0x7dd   :  { %v645_v28 = vmul.f32 1.442695, %v644_v27 }
 0x7de   :  { %v731_v33 = vpop.permute.xlu1 %730 }
 0x7df   :  { %5629 = vpow2.f32 %v645_v28 }
 0x7e2   :  { %v729_v35 = vpop.permute.xlu1 %728 }
 0x7e6   :  { %v1077_v38 = vpop.permute.xlu1 %1076 }
 0x7ea   :  { %v1242_v40 = vpop.permute.xlu1 %1241 }
 0x7ec   :  { %v5630_v29 = vpop.eup %5629 }
 0x7ed   :  { %v647_v30 = vsel %vm236_vm3, %v5630_v29, 0.0 }
 0x7ee   :  { %648 = vadd.xlane.f32.xlu0 %v647_v30  ;;  %v1407_v42 = vpop.permute.xlu1 %1406 }
 0x804   :  { %652 = vrot.lane.b32.xlu0 %v5805_v47, %s5768_s27 }
 0x808   :  { %911 = vrot.lane.b32.xlu0 %v5803_v46, %s5758_s0 }
 0x80c   :  { %1074 = vrot.lane.b32.xlu0 %v5803_v46, %s5761_s20 }
 0x810   :  { %1239 = vrot.lane.b32.xlu0 %v5803_v46, %s5764_s23 }
 0x814   :  { %1404 = vrot.lane.b32.xlu0 %v5803_v46, %s5767_s26 }
 0x877   :  { %v649_v31 = vpop.xlane.xlu0 %648 }
 0x878   :  { %5631 = vrcp.f32 %v649_v31 }
 0x87b   :  { %v653_v32 = vpop.permute.xlu0 %652 }
 0x87c   :  { %5247 = vmatpush3.msra.mxu0 %v653_v32 }
 0x87d   :  { %5251 = vmatprep.subr.mxu0 %v5756_v45 }
 0x87f   :  { %v912_v37 = vpop.permute.xlu0 %911 }
 0x883   :  { %v1075_v39 = vpop.permute.xlu0 %1074 }
 0x885   :  { %v5632_v34 = vpop.eup %5631 }
 0x886   :  { %v651_v36 = vmul.f32 %v5632_v34, %v5630_v29 }
 0x887   :  { %v1240_v41 = vpop.permute.xlu0 %1239 }
 0x888   :  { %5249 = vmatmul.mubr.msk.f32.vlgmr.msra.gmra.mxu0 %vm236_vm3, %v651_v36 }
 0x889   :  { %5252 = vmatpush3.xpose.msk.msra.mxu0 %vm236_vm3, %v731_v33  ;;  %5253 = vmatprep.mubr.msk.f32.mxu0 %vm5757_vm2, %v5756_v45 }
 0x88a   :  { %5261 = vmatprep.subr.mxu0 %v5756_v45 }
 0x88b   :  { %v1405_v43 = vpop.permute.xlu0 %1404 }
 0x88c   :  { %5254 = vmatmul.mubr.msk.f32.vlgmr.msra.gmra.mxu0 %vm236_vm3, %v729_v35 }
 0x88d   :  { %5262 = vmatpush3.xpose.msk.msra.mxu0 %vm236_vm3, %v912_v37  ;;  %5263 = vmatprep.mubr.msk.f32.mxu0 %vm5757_vm2, %v5756_v45 }
 0x88e   :  { %5271 = vmatprep.subr.mxu0 %v5756_v45 }
 0x890   :  { %5264 = vmatmul.mubr.msk.f32.vlgmr.msra.gmra.mxu0 %vm236_vm3, %v5803_v46 }
 0x891   :  { %5272 = vmatpush3.xpose.msk.msra.mxu0 %vm236_vm3, %v1077_v38  ;;  %5273 = vmatprep.mubr.msk.f32.mxu0 %vm5757_vm2, %v5756_v45 }
 0x892   :  { %5281 = vmatprep.subr.mxu0 %v5756_v45 }
 0x894   :  { %5274 = vmatmul.mubr.msk.f32.vlgmr.msra.gmra.mxu0 %vm236_vm3, %v1075_v39 }
 0x895   :  { %5282 = vmatpush3.xpose.msk.msra.mxu0 %vm236_vm3, %v1242_v40  ;;  %5283 = vmatprep.mubr.msk.f32.mxu0 %vm5757_vm2, %v5756_v45 }
 0x896   :  { %5291 = vmatprep.subr.mxu0 %v5756_v45 }
 0x898   :  { %5284 = vmatmul.mubr.msk.f32.vlgmr.msra.gmra.mxu0 %vm236_vm3, %v1240_v41 }
 0x899   :  { %5292 = vmatpush3.xpose.msk.msra.mxu0 %vm236_vm3, %v1407_v42  ;;  %5293 = vmatprep.mubr.msk.f32.mxu0 %vm5757_vm2, %v5756_v45 }
 0x89c   :  { %5294 = vmatmul.mubr.msk.f32.vlgmr.msra.gmra.mxu0 %vm236_vm3, %v1405_v43 }
 0x948   :  { %v5907_v44 = vpop.f32.mrf.mxu0 }
 0x94a   :  { %v5250_v48 = vpop.f32.mrf.mxu0 }
 0x94c   :  { %v802_v49 = vpop.f32.mrf.mxu0 }
 0x94d   :  { %v803_v50 = vadd.f32 %v802_v49, %v5815_v51 }
 0x94e   :  { %v5255_v52 = vpop.f32.mrf.mxu0 }
 0x94f   :  { %v806_v53 = vsel %vm236_vm3, %v803_v50, -inf }
 0x950   :  { %807 = vmax.xlane.f32.xlu1 %v806_v53  ;;  %v983_v54 = vpop.f32.mrf.mxu0 }
 0x951   :  { %v984_v55 = vadd.f32 %v983_v54, %v5815_v51  ;;  %v156_v54 = vld [vmem:[#allocation2 + $0x120] sm:$0xff] }
 0x952   :  { %v5265_v56 = vpop.f32.mrf.mxu0  ;;  %5301 = vmatprep.subr.mxu0 %v156_v54 }
 0x953   :  { %v987_v57 = vsel %vm236_vm3, %v984_v55, -inf  ;;  %5302 = vmatpush3.msra.mxu0 %v156_v54 }
 0x954   :  { %988 = vmax.xlane.f32.xlu0 %v987_v57  ;;  %v1148_v58 = vpop.f32.mrf.mxu0  ;;  %v154_v57 = vld [vmem:[#allocation2 + $0x110] sm:$0xff] }
 0x955   :  { %v1149_v59 = vadd.f32 %v1148_v58, %v5815_v51  ;;  %v153_v58 = vld [vmem:[#allocation2 + $0x108] sm:$0xff] }
 0x956   :  { %v5275_v60 = vpop.f32.mrf.mxu0 }
 0x957   :  { %v1152_v61 = vsel %vm236_vm3, %v1149_v59, -inf }
 0x958   :  { %1153 = vmax.xlane.f32.xlu0 %v1152_v61  ;;  %v1313_v62 = vpop.f32.mrf.mxu0  ;;  %v1695_v61 = vld [vmem:[#allocation2 + $0x1a8] sm:$0xff] }
 0x959   :  { %v1314_v63 = vadd.f32 %v1313_v62, %v5815_v51  ;;  %v1694_v62 = vld [vmem:[#allocation2 + $0x1a0] sm:$0xff] }
 0x95a   :  { %v5285_v0 = vpop.f32.mrf.mxu0 }
 0x95b   :  { %v1317_v1 = vsel %vm236_vm3, %v1314_v63, -inf  ;;  %v1693_v0 = vld [vmem:[#allocation2 + $0x198] sm:$0xff] }
 0x95c   :  { %1318 = vmax.xlane.f32.xlu1 %v1317_v1  ;;  %v1478_v2 = vpop.f32.mrf.mxu0 }
 0x95d   :  { %v1479_v4 = vadd.f32 %v1478_v2, %v5815_v51 }
 0x95e   :  { %v5295_v5 = vpop.f32.mrf.mxu0 }
 0x95f   :  { %v1482_v6 = vsel %vm236_vm3, %v1479_v4, -inf }
 0x960   :  { %1483 = vmax.xlane.f32.xlu0 %v1482_v6 }
 0x96d   :  { %998 = vrot.lane.b32.xlu1 %v5803_v46, %s5762_s21 }
 0x971   :  { %1163 = vrot.lane.b32.xlu1 %v5803_v46, %s5763_s22 }
 0x976   :  { %817 = vrot.lane.b32.xlu0 %v5805_v47, %s5769_s28 }
 0x9d9   :  { %v808_v7 = vpop.xlane.xlu1 %807 }
 0x9da   :  { %v809_v8 = vsub.f32 %v803_v50, %v808_v7 }
 0x9dc   :  { %v810_v9 = vmul.f32 1.442695, %v809_v8 }
 0x9dd   :  { %v989_v10 = vpop.xlane.xlu0 %988 }
 0x9de   :  { %5633 = vpow2.f32 %v810_v9  ;;  %v990_v11 = vsub.f32 %v984_v55, %v989_v10  ;;  %v155_v55 = vld [vmem:[#allocation2 + $0x118] sm:$0xff] }
 0x9df   :  { %5303 = vmatprep.subr.mxu0 %v155_v55 }
 0x9e0   :  { %v991_v12 = vmul.f32 1.442695, %v990_v11  ;;  %5304 = vmatpush3.msra.mxu0 %v155_v55 }
 0x9e1   :  { %v1154_v13 = vpop.xlane.xlu0 %1153  ;;  %5305 = vmatprep.subr.mxu0 %v154_v57 }
 0x9e2   :  { %5635 = vpow2.f32 %v991_v12  ;;  %v1155_v14 = vsub.f32 %v1149_v59, %v1154_v13  ;;  %5306 = vmatpush3.msra.mxu0 %v154_v57 }
 0x9e3   :  { %5307 = vmatprep.subr.mxu0 %v153_v58 }
 0x9e4   :  { %v1156_v15 = vmul.f32 1.442695, %v1155_v14  ;;  %5308 = vmatpush3.msra.mxu0 %v153_v58 }
 0x9e5   :  { %v1319_v16 = vpop.xlane.xlu1 %1318  ;;  %5347 = vmatprep.subr.mxu0 %v5756_v45 }
 0x9e6   :  { %5637 = vpow2.f32 %v1156_v15  ;;  %v1320_v17 = vsub.f32 %v1314_v63, %v1319_v16 }
 0x9e8   :  { %v1321_v18 = vmul.f32 1.442695, %v1320_v17 }
 0x9e9   :  { %v1484_v19 = vpop.xlane.xlu0 %1483  ;;  %v999_v33 = vpop.permute.xlu1 %998 }
 0x9ea   :  { %5639 = vpow2.f32 %v1321_v18  ;;  %v1485_v21 = vsub.f32 %v1479_v4, %v1484_v19 }
 0x9eb   :  { %v5634_v22 = vpop.eup %5633 }
 0x9ec   :  { %v1486_v47 = vmul.f32 1.442695, %v1485_v21  ;;  %v812_v23 = vsel %vm236_vm3, %v5634_v22, 0.0  ;;  %v1691_v21 = vld [vmem:[#allocation2 + $0x188] sm:$0xff] }
 0x9ed   :  { %813 = vadd.xlane.f32.xlu1 %v812_v23  ;;  %v818_v24 = vpop.permute.xlu0 %817  ;;  %v1164_v34 = vpop.permute.xlu1 %1163  ;;  %v1688_v23 = vld [vmem:[#allocation2 + $0x170] sm:$0xff] }
 0x9ee   :  { %5641 = vpow2.f32 %v1486_v47  ;;  %5257 = vmatpush3.msra.mxu1 %v818_v24  ;;  %v1689_v47 = vld [vmem:[#allocation2 + $0x178] sm:$0xff]  ;;  %v1687_v24 = vld [vmem:[#allocation2 + $0x168] sm:$0xff] }
 0x9ef   :  { %v5636_v25 = vpop.eup %5635  ;;  %5266 = vmatprep.subr.mxu1 %v5756_v45 }
 0x9f0   :  { %v993_v26 = vsel %vm236_vm3, %v5636_v25, 0.0 }
 0x9f1   :  { %994 = vadd.xlane.f32.xlu0 %v993_v26  ;;  %v1685_v26 = vld [vmem:[#allocation2 + $0x158] sm:$0xff] }
 0x9f3   :  { %v5638_v27 = vpop.eup %5637 }
 0x9f4   :  { %v1158_v28 = vsel %vm236_vm3, %v5638_v27, 0.0 }
 0x9f5   :  { %1159 = vadd.xlane.f32.xlu1 %v1158_v28  ;;  %v1683_v28 = vld [vmem:[#allocation2 + $0x148] sm:$0xff] }
 0x9f7   :  { %v5640_v29 = vpop.eup %5639 }
 0x9f8   :  { %v1323_v30 = vsel %vm236_vm3, %v5640_v29, 0.0 }
 0x9f9   :  { %1324 = vadd.xlane.f32.xlu0 %v1323_v30  ;;  %v1681_v30 = vld [vmem:[#allocation2 + $0x138] sm:$0xff] }
 0x9fb   :  { %v5642_v31 = vpop.eup %5641 }
 0x9fc   :  { %v1488_v32 = vsel %vm236_vm3, %v5642_v31, 0.0 }
 0x9fd   :  { %1489 = vadd.xlane.f32.xlu1 %v1488_v32  ;;  %v4889_v32 = vld [vmem:[#allocation2 + $0x128] ss:$0 sm:$0xff] }
 0xa0e   :  { %1493 = vrot.lane.b32.xlu1 %v5803_v46, %s5769_s28 }
 0xa0f   :  { %1328 = vrot.lane.b32.xlu0 %v5803_v46, %s5768_s27 }
 0xa12   :  { %898 = vrot.lane.b32.xlu1 %v5907_v44, %s5770_s29 }
 0xa13   :  { %894 = vrot.lane.b32.xlu0 %v5855_v20, %s5753_s13 }
 0xa76   :  { %v814_v35 = vpop.xlane.xlu1 %813 }
 0xa77   :  { %5643 = vrcp.f32 %v814_v35 }
 0xa7a   :  { %v995_v36 = vpop.xlane.xlu0 %994 }
 0xa7b   :  { %5645 = vrcp.f32 %v995_v36 }
 0xa7e   :  { %v1160_v37 = vpop.xlane.xlu1 %1159 }
 0xa7f   :  { %5647 = vrcp.f32 %v1160_v37 }
 0xa82   :  { %v1325_v38 = vpop.xlane.xlu0 %1324 }
 0xa83   :  { %5649 = vrcp.f32 %v1325_v38 }
 0xa84   :  { %v5644_v39 = vpop.eup %5643 }
 0xa85   :  { %v816_v40 = vmul.f32 %v5644_v39, %v5634_v22  ;;  %v1690_v22 = vld [vmem:[#allocation2 + $0x180] sm:$0xff] }
 0xa86   :  { %v1490_v46 = vpop.xlane.xlu1 %1489  ;;  %v1329_v44 = vpop.permute.xlu0 %1328 }
 0xa87   :  { %5651 = vrcp.f32 %v1490_v46  ;;  %5259 = vmatmul.mubr.msk.f32.vlgmr.msra.gmra.mxu1 %vm236_vm3, %v816_v40 }
 0xa88   :  { %v5646_v41 = vpop.eup %5645  ;;  %5267 = vmatpush3.msra.mxu1 %v999_v33  ;;  %5268 = vmatprep.mubr.msk.f32.mxu1 %vm5757_vm2, %v5756_v45 }
 0xa89   :  { %5276 = vmatprep.subr.mxu1 %v5756_v45  ;;  %v997_v20 = vmul.f32 %v5646_v41, %v5636_v25  ;;  %v1686_v25 = vld [vmem:[#allocation2 + $0x160] sm:$0xff] }
 0xa8a   :  { %v1494_v50 = vpop.permute.xlu1 %1493  ;;  %v895_v8 = vpop.permute.xlu0 %894 }
 0xa8b   :  { %5269 = vmatmul.mubr.msk.f32.vlgmr.msra.gmra.mxu1 %vm236_vm3, %v997_v20  ;;  %v905_v10 = vsel %vm236_vm3, %v5835_v3, %v895_v8  ;;  %v1692_v3 = vld [vmem:[#allocation2 + $0x190] sm:$0xff] }
 0xa8c   :  { %v5648_v42 = vpop.eup %5647  ;;  %5277 = vmatpush3.msra.mxu1 %v1164_v34  ;;  %5278 = vmatprep.mubr.msk.f32.mxu1 %vm5757_vm2, %v5756_v45 }
 0xa8d   :  { %5286 = vmatprep.subr.mxu1 %v5756_v45  ;;  %v1162_v43 = vmul.f32 %v5648_v42, %v5638_v27  ;;  %v1684_v27 = vld [vmem:[#allocation2 + $0x150] sm:$0xff] }
 0xa8e   :  { %v899_v9 = vpop.permute.xlu1 %898 }
 0xa8f   :  { %5279 = vmatmul.mubr.msk.f32.vlgmr.msra.gmra.mxu1 %vm236_vm3, %v1162_v43  ;;  %v907_v11 = vsel %vm906_vm5, %v905_v10, %v899_v9 }
 0xa90   :  { %v5650_v48 = vpop.eup %5649  ;;  %5287 = vmatpush3.msra.mxu1 %v1329_v44  ;;  %5288 = vmatprep.mubr.msk.f32.mxu1 %vm5757_vm2, %v5756_v45 }
 0xa91   :  { %5296 = vmatprep.subr.mxu1 %v5756_v45  ;;  %v1327_v49 = vmul.f32 %v5650_v48, %v5640_v29  ;;  %v1682_v29 = vld [vmem:[#allocation2 + $0x140] sm:$0xff] }
 0xa93   :  { %5289 = vmatmul.mubr.msk.f32.vlgmr.msra.gmra.mxu1 %vm236_vm3, %v1327_v49 }
 0xa94   :  { %v5652_v52 = vpop.eup %5651  ;;  %5297 = vmatpush3.msra.mxu1 %v1494_v50  ;;  %5298 = vmatprep.mubr.msk.f32.mxu1 %vm5757_vm2, %v5756_v45 }
 0xa95   :  { %v1492_v53 = vmul.f32 %v5652_v52, %v5642_v31  ;;  %5312 = vmatprep.subr.mxu1 %v1695_v61  ;;  %v1680_v31 = vld [vmem:[#allocation2 + $0x130] sm:$0xff] }
 0xa97   :  { %5299 = vmatmul.mubr.msk.f32.vlgmr.msra.gmra.mxu1 %vm236_vm3, %v1492_v53 }
 0xa98   :  { %5313 = vmatpush3.msra.mxu1 %v1695_v61 }
 0xa99   :  { %5314 = vmatprep.subr.mxu1 %v1694_v62 }
 0xa9a   :  { %5315 = vmatpush3.msra.mxu1 %v1694_v62 }
 0xa9b   :  { %5316 = vmatprep.subr.mxu1 %v1693_v0 }
 0xa9c   :  { %5317 = vmatpush3.msra.mxu1 %v1693_v0 }
 0xa9d   :  { %5318 = vmatprep.subr.mxu1 %v1692_v3 }
 0xa9e   :  { %5319 = vmatpush3.msra.mxu1 %v1692_v3 }
 0xa9f   :  { %5320 = vmatprep.subr.mxu1 %v1691_v21 }
 0xaa0   :  { %5321 = vmatpush3.msra.mxu1 %v1691_v21 }
 0xaa1   :  { %5322 = vmatprep.subr.mxu1 %v1690_v22 }
 0xaa2   :  { %5323 = vmatpush3.msra.mxu1 %v1690_v22 }
 0xaa3   :  { %5324 = vmatprep.subr.mxu1 %v1689_v47 }
 0xaa4   :  { %5325 = vmatpush3.msra.mxu1 %v1689_v47 }
 0xaa5   :  { %5326 = vmatprep.subr.mxu1 %v1688_v23 }
 0xaa6   :  { %5327 = vmatpush3.msra.mxu1 %v1688_v23 }
 0xaa7   :  { %5328 = vmatprep.subr.mxu1 %v1687_v24 }
 0xaa8   :  { %5329 = vmatpush3.msra.mxu1 %v1687_v24 }
 0xaa9   :  { %5330 = vmatprep.subr.mxu1 %v1686_v25 }
 0xaaa   :  { %5331 = vmatpush3.msra.mxu1 %v1686_v25 }
 0xaab   :  { %5332 = vmatprep.subr.mxu1 %v1685_v26 }
 0xaac   :  { %5333 = vmatpush3.msra.mxu1 %v1685_v26 }
 0xaad   :  { %5334 = vmatprep.subr.mxu1 %v1684_v27 }
 0xaae   :  { %5335 = vmatpush3.msra.mxu1 %v1684_v27 }
 0xaaf   :  { %5336 = vmatprep.subr.mxu1 %v1683_v28 }
 0xab0   :  { %5337 = vmatpush3.msra.mxu1 %v1683_v28 }
 0xab1   :  { %5338 = vmatprep.subr.mxu1 %v1682_v29 }
 0xab2   :  { %5339 = vmatpush3.msra.mxu1 %v1682_v29 }
 0xab3   :  { %5340 = vmatprep.subr.mxu1 %v1681_v30 }
 0xab4   :  { %5341 = vmatpush3.msra.mxu1 %v1681_v30 }
 0xab5   :  { %5342 = vmatprep.subr.mxu1 %v1680_v31 }
 0xab6   :  { %5343 = vmatpush3.msra.mxu1 %v1680_v31 }
 0xab7   :  { %5382 = vmatprep.subr.mxu1 %v5756_v45 }
 0xb47   :  { %v889_v56 = vpop.f32.mrf.mxu1 }
 0xb48   :  { %902 = vrot.lane.b32.xlu1 %v889_v56, %s5771_s30 }
 0xb49   :  { %v5260_v59 = vpop.f32.mrf.mxu1 }
 0xb4b   :  { %v1070_v60 = vpop.f32.mrf.mxu1 }
 0xb4d   :  { %v5270_v63 = vpop.f32.mrf.mxu1 }
 0xb4f   :  { %v1235_v1 = vpop.f32.mrf.mxu1 }
 0xb50   :  { %1570 = vrot.lane.b32.xlu0 %v1235_v1, %s5753_s13 }
 0xb51   :  { %v5280_v2 = vpop.f32.mrf.mxu1 }
 0xb53   :  { %v1400_v4 = vpop.f32.mrf.mxu1 }
 0xb54   :  { %1574 = vrot.lane.b32.xlu0 %v1400_v4, %s5770_s29 }
 0xb55   :  { %v5290_v5 = vpop.f32.mrf.mxu1 }
 0xb57   :  { %v1565_v6 = vpop.f32.mrf.mxu1 }
 0xb58   :  { %1578 = vrot.lane.b32.xlu1 %v1565_v6, %s5771_s30 }
 0xb59   :  { %v5300_v7 = vpop.f32.mrf.mxu1 }
 0xbba   :  { %v903_v12 = vpop.permute.xlu1 %902 }
 0xbbb   :  { %v909_v13 = vsel %vm908_vm6, %v907_v11, %v903_v12 }
 0xbbc   :  { %5309 = vmatprep.mubr.msk.f32.mxu0 %vm1588_vm7, %v909_v13 }
 0xbc2   :  { %v1571_v14 = vpop.permute.xlu0 %1570 }
 0xbc3   :  { %v1581_v16 = vsel %vm236_vm3, %v1070_v60, %v1571_v14 }
 0xbc6   :  { %v1575_v15 = vpop.permute.xlu0 %1574 }
 0xbc7   :  { %v1582_v17 = vsel %vm906_vm5, %v1581_v16, %v1575_v15 }
 0xbca   :  { %v1579_v18 = vpop.permute.xlu1 %1578 }
 0xbcb   :  { %v1583_v19 = vsel %vm908_vm6, %v1582_v17, %v1579_v18 }
 0xbcc   :  { %5310 = vmatmul.mubr.msk.f32.vlgmr.msra.gmra.mxu0 %vm1588_vm7, %v1583_v19 }
 0xbcd   :  { %5349 = vmatprep.mubr.msk.f32.mxu0 %vm5757_vm2, %v5756_v45 }
 0xc8c   :  { %v5311_v33 = vpop.f32.mrf.mxu0 }
 0xc8d   :  { %v1667_v34 = vadd.f32 %v5311_v33, %v4889_v32 }
 0xc8e   :  { %v1661_v35 = vpop.f32.mrf.mxu0 }
 0xc8f   :  { %v1673_v36 = vmul.f32 0.70710677, %v1667_v34  ;;  %v1662_v37 = vadd.f32 %v4889_v32, %v1661_v35  ;;  %v1671_v42 = vmul.f32 0.5, %v1667_v34 }
 0xc91   :  { %5653 = verf.f32 %v1673_v36  ;;  %v1672_v38 = vmul.f32 0.70710677, %v1662_v37  ;;  %v1670_v41 = vmul.f32 0.5, %v1662_v37 }
 0xc93   :  { %5655 = verf.f32 %v1672_v38 }
 0xc9e   :  { %v5654_v39 = vpop.eup %5653 }
 0xc9f   :  { %v1677_v46 = vadd.f32 1.0, %v5654_v39 }
 0xca0   :  { %v5656_v40 = vpop.eup %5655 }
 0xca1   :  { %v1676_v20 = vadd.f32 1.0, %v5656_v40  ;;  %v1679_v44 = vmul.f32 %v1677_v46, %v1671_v42 }
 0xca3   :  { %v1678_v43 = vmul.f32 %v1676_v20, %v1670_v41 }
 0xca5   :  { %5344 = vmatprep.mubr.f32.mxu1 %v1678_v43 }
 0xca6   :  { %5345 = vmatmul.mubr.f32.vlgmr.msra.gmra.mxu1 %v1679_v44 }
 0xca7   :  { %5384 = vmatprep.mubr.msk.f32.mxu1 %vm5757_vm2, %v5756_v45 }
 0xd66   :  { %v5974_v48 = vpop.f32.mrf.mxu1 }
 0xd68   :  { %v5976_v49 = vpop.f32.mrf.mxu1 }
 0xd69   :  { %1777 = vrot.lane.b32.xlu0 %v5976_v49, %s5758_s0 }
 0xddb   :  { %v1778_v50 = vpop.permute.xlu0 %1777 }
 0xddc   :  { %5348 = vmatpush3.xpose.msk.msra.mxu0 %vm236_vm3, %v1778_v50 }
 0xddd   :  { %5352 = vmatprep.subr.mxu0 %v5756_v45 }
 0xddf   :  { %5350 = vmatmul.mubr.msk.f32.vlgmr.msra.gmra.mxu0 %vm236_vm3, %v5976_v49 }
 0xde0   :  { %5354 = vmatprep.mubr.msk.f32.mxu0 %vm5757_vm2, %v5756_v45 }
 0xe9f   :  { %v1849_v52 = vpop.f32.mrf.mxu0 }
 0xea0   :  { %v1850_v53 = vadd.f32 %v1849_v52, %v5815_v51 }
 0xea1   :  { %v5351_v54 = vpop.f32.mrf.mxu0 }
 0xea2   :  { %v1853_v55 = vsel %vm236_vm3, %v1850_v53, -inf }
 0xea3   :  { %1854 = vmax.xlane.f32.xlu1 %v1853_v55 }
 0xeb4   :  { %1942 = vrot.lane.b32.xlu1 %v5976_v49, %s5760_s1 }
 0xeb8   :  { %1940 = vrot.lane.b32.xlu1 %v5976_v49, %s5761_s20 }
 0xf2c   :  { %v1855_v56 = vpop.xlane.xlu1 %1854 }
 0xf2d   :  { %v1856_v57 = vsub.f32 %v1850_v53, %v1855_v56 }
 0xf2f   :  { %v1857_v58 = vmul.f32 1.442695, %v1856_v57 }
 0xf30   :  { %v1943_v0 = vpop.permute.xlu1 %1942 }
 0xf31   :  { %5657 = vpow2.f32 %v1857_v58 }
 0xf34   :  { %v1941_v2 = vpop.permute.xlu1 %1940 }
 0xf3e   :  { %v5658_v59 = vpop.eup %5657 }
 0xf3f   :  { %v1859_v60 = vsel %vm236_vm3, %v5658_v59, 0.0 }
 0xf40   :  { %1860 = vadd.xlane.f32.xlu0 %v1859_v60 }
 0xf56   :  { %1864 = vrot.lane.b32.xlu0 %v5976_v49, %s5762_s21 }
 0xfc9   :  { %v1861_v61 = vpop.xlane.xlu0 %1860 }
 0xfca   :  { %5659 = vrcp.f32 %v1861_v61 }
 0xfcd   :  { %v1865_v62 = vpop.permute.xlu0 %1864 }
 0xfce   :  { %5353 = vmatpush3.msra.mxu0 %v1865_v62 }
 0xfcf   :  { %5357 = vmatprep.subr.mxu0 %v5756_v45 }
 0xfd7   :  { %v5660_v63 = vpop.eup %5659 }
 0xfd8   :  { %v1863_v1 = vmul.f32 %v5660_v63, %v5658_v59 }
 0xfda   :  { %5355 = vmatmul.mubr.msk.f32.vlgmr.msra.gmra.mxu0 %vm236_vm3, %v1863_v1 }
 0xfdb   :  { %5358 = vmatpush3.xpose.msk.msra.mxu0 %vm236_vm3, %v1943_v0  ;;  %5359 = vmatprep.mubr.msk.f32.mxu0 %vm5757_vm2, %v5756_v45 }
 0xfdc   :  { %5362 = vmatprep.subr.mxu0 %v5756_v45 }
 0xfde   :  { %5360 = vmatmul.mubr.msk.f32.vlgmr.msra.gmra.mxu0 %vm236_vm3, %v1941_v2 }
 0xfdf   :  { %5364 = vmatprep.mubr.msk.f32.mxu0 %vm5757_vm2, %v5756_v45 }
0x109a   :  { %v6004_v4 = vpop.f32.mrf.mxu0 }
0x109c   :  { %v5356_v5 = vpop.f32.mrf.mxu0 }
0x109e   :  { %v2014_v6 = vpop.f32.mrf.mxu0 }
0x109f   :  { %v2015_v7 = vadd.f32 %v2014_v6, %v5815_v51 }
0x10a0   :  { %v5361_v8 = vpop.f32.mrf.mxu0 }
0x10a1   :  { %v2018_v9 = vsel %vm236_vm3, %v2015_v7, -inf }
0x10a2   :  { %2019 = vmax.xlane.f32.xlu0 %v2018_v9 }
0x10b8   :  { %2029 = vrot.lane.b32.xlu0 %v5976_v49, %s5763_s22 }
0x10bc   :  { %2105 = vrot.lane.b32.xlu0 %v5976_v49, %s5764_s23 }
0x112b   :  { %v2020_v10 = vpop.xlane.xlu0 %2019 }
0x112c   :  { %v2021_v11 = vsub.f32 %v2015_v7, %v2020_v10 }
0x112e   :  { %v2022_v12 = vmul.f32 1.442695, %v2021_v11 }
0x112f   :  { %v2030_v13 = vpop.permute.xlu0 %2029 }
0x1130   :  { %5661 = vpow2.f32 %v2022_v12  ;;  %5363 = vmatpush3.msra.mxu0 %v2030_v13 }
0x1131   :  { %5367 = vmatprep.subr.mxu0 %v5756_v45 }
0x1133   :  { %v2106_v3 = vpop.permute.xlu0 %2105 }
0x113d   :  { %v5662_v14 = vpop.eup %5661 }
0x113e   :  { %v2024_v15 = vsel %vm236_vm3, %v5662_v14, 0.0 }
0x113f   :  { %2025 = vadd.xlane.f32.xlu1 %v2024_v15 }
0x1150   :  { %2107 = vrot.lane.b32.xlu1 %v5976_v49, %s5765_s24 }
0x11c8   :  { %v2026_v16 = vpop.xlane.xlu1 %2025 }
0x11c9   :  { %5663 = vrcp.f32 %v2026_v16 }
0x11cc   :  { %v2108_v19 = vpop.permute.xlu1 %2107 }
0x11d6   :  { %v5664_v17 = vpop.eup %5663 }
0x11d7   :  { %v2028_v18 = vmul.f32 %v5664_v17, %v5662_v14 }
0x11d9   :  { %5365 = vmatmul.mubr.msk.f32.vlgmr.msra.gmra.mxu0 %vm236_vm3, %v2028_v18 }
0x11da   :  { %5368 = vmatpush3.xpose.msk.msra.mxu0 %vm236_vm3, %v2108_v19  ;;  %5369 = vmatprep.mubr.msk.f32.mxu0 %vm5757_vm2, %v5756_v45 }
0x11db   :  { %5372 = vmatprep.subr.mxu0 %v5756_v45 }
0x11dd   :  { %5370 = vmatmul.mubr.msk.f32.vlgmr.msra.gmra.mxu0 %vm236_vm3, %v2106_v3 }
0x11de   :  { %5374 = vmatprep.mubr.msk.f32.mxu0 %vm5757_vm2, %v5756_v45 }
0x1299   :  { %v6024_v21 = vpop.f32.mrf.mxu0 }
0x129b   :  { %v5366_v22 = vpop.f32.mrf.mxu0 }
0x129d   :  { %v2179_v47 = vpop.f32.mrf.mxu0 }
0x129e   :  { %v2180_v23 = vadd.f32 %v2179_v47, %v5815_v51 }
0x129f   :  { %v5371_v24 = vpop.f32.mrf.mxu0 }
0x12a0   :  { %v2183_v25 = vsel %vm236_vm3, %v2180_v23, -inf }
0x12a1   :  { %2184 = vmax.xlane.f32.xlu1 %v2183_v25 }
0x12b2   :  { %2272 = vrot.lane.b32.xlu1 %v5976_v49, %s5766_s25 }
0x12b6   :  { %2270 = vrot.lane.b32.xlu1 %v5976_v49, %s5767_s26 }
0x12ba   :  { %2616 = vrot.lane.b32.xlu1 %v5974_v48, %s5760_s1 }
0x12be   :  { %2781 = vrot.lane.b32.xlu1 %v5974_v48, %s5765_s24 }
0x12c2   :  { %2946 = vrot.lane.b32.xlu1 %v5974_v48, %s5766_s25 }
0x132a   :  { %v2185_v26 = vpop.xlane.xlu1 %2184 }
0x132b   :  { %v2186_v27 = vsub.f32 %v2180_v23, %v2185_v26 }
0x132d   :  { %v2187_v28 = vmul.f32 1.442695, %v2186_v27 }
0x132e   :  { %v2273_v33 = vpop.permute.xlu1 %2272 }
0x132f   :  { %5665 = vpow2.f32 %v2187_v28 }
0x1332   :  { %v2271_v35 = vpop.permute.xlu1 %2270 }
0x1336   :  { %v2617_v38 = vpop.permute.xlu1 %2616 }
0x133a   :  { %v2782_v40 = vpop.permute.xlu1 %2781 }
0x133c   :  { %v5666_v29 = vpop.eup %5665 }
0x133d   :  { %v2189_v30 = vsel %vm236_vm3, %v5666_v29, 0.0 }
0x133e   :  { %2190 = vadd.xlane.f32.xlu0 %v2189_v30  ;;  %v2947_v41 = vpop.permute.xlu1 %2946 }
0x1354   :  { %2194 = vrot.lane.b32.xlu0 %v5976_v49, %s5768_s27 }
0x1358   :  { %2451 = vrot.lane.b32.xlu0 %v5974_v48, %s5758_s0 }
0x135c   :  { %2614 = vrot.lane.b32.xlu0 %v5974_v48, %s5761_s20 }
0x1360   :  { %2779 = vrot.lane.b32.xlu0 %v5974_v48, %s5764_s23 }
0x1364   :  { %2944 = vrot.lane.b32.xlu0 %v5974_v48, %s5767_s26 }
0x13c7   :  { %v2191_v31 = vpop.xlane.xlu0 %2190 }
0x13c8   :  { %5667 = vrcp.f32 %v2191_v31 }
0x13cb   :  { %v2195_v32 = vpop.permute.xlu0 %2194 }
0x13cc   :  { %5373 = vmatpush3.msra.mxu0 %v2195_v32 }
0x13cd   :  { %5377 = vmatprep.subr.mxu0 %v5756_v45 }
0x13cf   :  { %v2452_v37 = vpop.permute.xlu0 %2451 }
0x13d3   :  { %v2615_v39 = vpop.permute.xlu0 %2614 }
0x13d5   :  { %v5668_v34 = vpop.eup %5667 }
0x13d6   :  { %v2193_v36 = vmul.f32 %v5668_v34, %v5666_v29 }
0x13d7   :  { %v2780_v46 = vpop.permute.xlu0 %2779 }
0x13d8   :  { %5375 = vmatmul.mubr.msk.f32.vlgmr.msra.gmra.mxu0 %vm236_vm3, %v2193_v36 }
0x13d9   :  { %5378 = vmatpush3.xpose.msk.msra.mxu0 %vm236_vm3, %v2273_v33  ;;  %5379 = vmatprep.mubr.msk.f32.mxu0 %vm5757_vm2, %v5756_v45 }
0x13da   :  { %5387 = vmatprep.subr.mxu0 %v5756_v45 }
0x13db   :  { %v2945_v20 = vpop.permute.xlu0 %2944 }
0x13dc   :  { %5380 = vmatmul.mubr.msk.f32.vlgmr.msra.gmra.mxu0 %vm236_vm3, %v2271_v35 }
0x13dd   :  { %5388 = vmatpush3.xpose.msk.msra.mxu0 %vm236_vm3, %v2452_v37  ;;  %5389 = vmatprep.mubr.msk.f32.mxu0 %vm5757_vm2, %v5756_v45 }
0x13de   :  { %5397 = vmatprep.subr.mxu0 %v5756_v45 }
0x13e0   :  { %5390 = vmatmul.mubr.msk.f32.vlgmr.msra.gmra.mxu0 %vm236_vm3, %v5974_v48 }
0x13e1   :  { %5398 = vmatpush3.xpose.msk.msra.mxu0 %vm236_vm3, %v2617_v38  ;;  %5399 = vmatprep.mubr.msk.f32.mxu0 %vm5757_vm2, %v5756_v45 }
0x13e2   :  { %5407 = vmatprep.subr.mxu0 %v5756_v45 }
0x13e4   :  { %5400 = vmatmul.mubr.msk.f32.vlgmr.msra.gmra.mxu0 %vm236_vm3, %v2615_v39 }
0x13e5   :  { %5408 = vmatpush3.xpose.msk.msra.mxu0 %vm236_vm3, %v2782_v40  ;;  %5409 = vmatprep.mubr.msk.f32.mxu0 %vm5757_vm2, %v5756_v45 }
0x13e6   :  { %5417 = vmatprep.subr.mxu0 %v5756_v45 }
0x13e8   :  { %5410 = vmatmul.mubr.msk.f32.vlgmr.msra.gmra.mxu0 %vm236_vm3, %v2780_v46 }
0x13e9   :  { %5418 = vmatpush3.xpose.msk.msra.mxu0 %vm236_vm3, %v2947_v41  ;;  %5419 = vmatprep.mubr.msk.f32.mxu0 %vm5757_vm2, %v5756_v45 }
0x13ec   :  { %5420 = vmatmul.mubr.msk.f32.vlgmr.msra.gmra.mxu0 %vm236_vm3, %v2945_v20 }
0x1498   :  { %v6076_v42 = vpop.f32.mrf.mxu0 }
0x149a   :  { %v5376_v43 = vpop.f32.mrf.mxu0 }
0x149c   :  { %v2344_v44 = vpop.f32.mrf.mxu0 }
0x149d   :  { %v2345_v50 = vadd.f32 %v2344_v44, %v5815_v51 }
0x149e   :  { %v5381_v52 = vpop.f32.mrf.mxu0 }
0x149f   :  { %v2348_v53 = vsel %vm236_vm3, %v2345_v50, -inf }
0x14a0   :  { %2349 = vmax.xlane.f32.xlu1 %v2348_v53  ;;  %v2523_v54 = vpop.f32.mrf.mxu0 }
0x14a1   :  { %v2524_v55 = vadd.f32 %v2523_v54, %v5815_v51  ;;  %v1699_v54 = vld [vmem:[#allocation2 + $0x1c8] sm:$0xff] }
0x14a2   :  { %v5391_v56 = vpop.f32.mrf.mxu0  ;;  %5427 = vmatprep.subr.mxu0 %v1699_v54 }
0x14a3   :  { %v2527_v57 = vsel %vm236_vm3, %v2524_v55, -inf  ;;  %5428 = vmatpush3.msra.mxu0 %v1699_v54 }
0x14a4   :  { %2528 = vmax.xlane.f32.xlu0 %v2527_v57  ;;  %v2688_v58 = vpop.f32.mrf.mxu0  ;;  %v1697_v57 = vld [vmem:[#allocation2 + $0x1b8] sm:$0xff] }
0x14a5   :  { %v2689_v59 = vadd.f32 %v2688_v58, %v5815_v51  ;;  %v1696_v58 = vld [vmem:[#allocation2 + $0x1b0] sm:$0xff] }
0x14a6   :  { %v5401_v60 = vpop.f32.mrf.mxu0 }
0x14a7   :  { %v2692_v61 = vsel %vm236_vm3, %v2689_v59, -inf }
0x14a8   :  { %2693 = vmax.xlane.f32.xlu0 %v2692_v61  ;;  %v2853_v62 = vpop.f32.mrf.mxu0  ;;  %v3234_v61 = vld [vmem:[#allocation2 + $0x250] sm:$0xff] }
0x14a9   :  { %v2854_v63 = vadd.f32 %v2853_v62, %v5815_v51  ;;  %v3233_v62 = vld [vmem:[#allocation2 + $0x248] sm:$0xff] }
0x14aa   :  { %v5411_v0 = vpop.f32.mrf.mxu0 }
0x14ab   :  { %v2857_v1 = vsel %vm236_vm3, %v2854_v63, -inf  ;;  %v3232_v0 = vld [vmem:[#allocation2 + $0x240] sm:$0xff] }
0x14ac   :  { %2858 = vmax.xlane.f32.xlu1 %v2857_v1  ;;  %v3018_v2 = vpop.f32.mrf.mxu0 }
0x14ad   :  { %v3019_v5 = vadd.f32 %v3018_v2, %v5815_v51 }
0x14ae   :  { %v5421_v6 = vpop.f32.mrf.mxu0 }
0x14af   :  { %v3022_v7 = vsel %vm236_vm3, %v3019_v5, -inf }
0x14b0   :  { %3023 = vmax.xlane.f32.xlu0 %v3022_v7 }
0x14bd   :  { %2538 = vrot.lane.b32.xlu1 %v5974_v48, %s5762_s21 }
0x14c1   :  { %2703 = vrot.lane.b32.xlu1 %v5974_v48, %s5763_s22 }
0x14c6   :  { %2359 = vrot.lane.b32.xlu0 %v5976_v49, %s5769_s28 }
0x1529   :  { %v2350_v8 = vpop.xlane.xlu1 %2349 }
0x152a   :  { %v2351_v9 = vsub.f32 %v2345_v50, %v2350_v8 }
0x152c   :  { %v2352_v10 = vmul.f32 1.442695, %v2351_v9 }
0x152d   :  { %v2529_v11 = vpop.xlane.xlu0 %2528 }
0x152e   :  { %5669 = vpow2.f32 %v2352_v10  ;;  %v2530_v12 = vsub.f32 %v2524_v55, %v2529_v11  ;;  %v1698_v55 = vld [vmem:[#allocation2 + $0x1c0] sm:$0xff] }
0x152f   :  { %5429 = vmatprep.subr.mxu0 %v1698_v55 }
0x1530   :  { %v2531_v13 = vmul.f32 1.442695, %v2530_v12  ;;  %5430 = vmatpush3.msra.mxu0 %v1698_v55 }
0x1531   :  { %v2694_v14 = vpop.xlane.xlu0 %2693  ;;  %5431 = vmatprep.subr.mxu0 %v1697_v57 }
0x1532   :  { %5671 = vpow2.f32 %v2531_v13  ;;  %v2695_v15 = vsub.f32 %v2689_v59, %v2694_v14  ;;  %5432 = vmatpush3.msra.mxu0 %v1697_v57 }
0x1533   :  { %5433 = vmatprep.subr.mxu0 %v1696_v58 }
0x1534   :  { %v2696_v16 = vmul.f32 1.442695, %v2695_v15  ;;  %5434 = vmatpush3.msra.mxu0 %v1696_v58 }
0x1535   :  { %v2859_v17 = vpop.xlane.xlu1 %2858  ;;  %5473 = vmatprep.subr.mxu0 %v5756_v45 }
0x1536   :  { %5673 = vpow2.f32 %v2696_v16  ;;  %v2860_v18 = vsub.f32 %v2854_v63, %v2859_v17 }
0x1538   :  { %v2861_v19 = vmul.f32 1.442695, %v2860_v18 }
0x1539   :  { %v3024_v3 = vpop.xlane.xlu0 %3023  ;;  %v2539_v33 = vpop.permute.xlu1 %2538 }
0x153a   :  { %5675 = vpow2.f32 %v2861_v19  ;;  %v3025_v22 = vsub.f32 %v3019_v5, %v3024_v3 }
0x153b   :  { %v5670_v47 = vpop.eup %5669 }
0x153c   :  { %v3026_v49 = vmul.f32 1.442695, %v3025_v22  ;;  %v2354_v23 = vsel %vm236_vm3, %v5670_v47, 0.0  ;;  %v3230_v22 = vld [vmem:[#allocation2 + $0x230] sm:$0xff] }
0x153d   :  { %2355 = vadd.xlane.f32.xlu1 %v2354_v23  ;;  %v2360_v24 = vpop.permute.xlu0 %2359  ;;  %v2704_v34 = vpop.permute.xlu1 %2703  ;;  %v3227_v23 = vld [vmem:[#allocation2 + $0x218] sm:$0xff] }
0x153e   :  { %5677 = vpow2.f32 %v3026_v49  ;;  %5383 = vmatpush3.msra.mxu1 %v2360_v24  ;;  %v3228_v49 = vld [vmem:[#allocation2 + $0x220] sm:$0xff]  ;;  %v3226_v24 = vld [vmem:[#allocation2 + $0x210] sm:$0xff] }
0x153f   :  { %v5672_v25 = vpop.eup %5671  ;;  %5392 = vmatprep.subr.mxu1 %v5756_v45 }
0x1540   :  { %v2533_v26 = vsel %vm236_vm3, %v5672_v25, 0.0 }
0x1541   :  { %2534 = vadd.xlane.f32.xlu0 %v2533_v26  ;;  %v3224_v26 = vld [vmem:[#allocation2 + $0x200] sm:$0xff] }
0x1543   :  { %v5674_v27 = vpop.eup %5673 }
0x1544   :  { %v2698_v28 = vsel %vm236_vm3, %v5674_v27, 0.0 }
0x1545   :  { %2699 = vadd.xlane.f32.xlu1 %v2698_v28  ;;  %v3222_v28 = vld [vmem:[#allocation2 + $0x1f0] sm:$0xff] }
0x1547   :  { %v5676_v29 = vpop.eup %5675 }
0x1548   :  { %v2863_v30 = vsel %vm236_vm3, %v5676_v29, 0.0 }
0x1549   :  { %2864 = vadd.xlane.f32.xlu0 %v2863_v30  ;;  %v3220_v30 = vld [vmem:[#allocation2 + $0x1e0] sm:$0xff] }
0x154b   :  { %v5678_v31 = vpop.eup %5677 }
0x154c   :  { %v3028_v32 = vsel %vm236_vm3, %v5678_v31, 0.0 }
0x154d   :  { %3029 = vadd.xlane.f32.xlu1 %v3028_v32  ;;  %v4916_v32 = vld [vmem:[#allocation2 + $0x1d0] ss:$0 sm:$0xff] }
0x155e   :  { %3033 = vrot.lane.b32.xlu1 %v5974_v48, %s5769_s28 }
0x155f   :  { %2868 = vrot.lane.b32.xlu0 %v5974_v48, %s5768_s27 }
0x1562   :  { %2440 = vrot.lane.b32.xlu1 %v6076_v42, %s5770_s29 }
0x1563   :  { %2436 = vrot.lane.b32.xlu0 %v6024_v21, %s5753_s13 }
0x15c6   :  { %v2356_v35 = vpop.xlane.xlu1 %2355 }
0x15c7   :  { %5679 = vrcp.f32 %v2356_v35 }
0x15ca   :  { %v2535_v36 = vpop.xlane.xlu0 %2534 }
0x15cb   :  { %5681 = vrcp.f32 %v2535_v36 }
0x15ce   :  { %v2700_v37 = vpop.xlane.xlu1 %2699 }
0x15cf   :  { %5683 = vrcp.f32 %v2700_v37 }
0x15d2   :  { %v2865_v38 = vpop.xlane.xlu0 %2864 }
0x15d3   :  { %5685 = vrcp.f32 %v2865_v38 }
0x15d4   :  { %v5680_v39 = vpop.eup %5679 }
0x15d5   :  { %v2358_v40 = vmul.f32 %v5680_v39, %v5670_v47  ;;  %v3229_v47 = vld [vmem:[#allocation2 + $0x228] sm:$0xff] }
0x15d6   :  { %v3030_v46 = vpop.xlane.xlu1 %3029  ;;  %v2869_v42 = vpop.permute.xlu0 %2868 }
0x15d7   :  { %5687 = vrcp.f32 %v3030_v46  ;;  %5385 = vmatmul.mubr.msk.f32.vlgmr.msra.gmra.mxu1 %vm236_vm3, %v2358_v40 }
0x15d8   :  { %v5682_v48 = vpop.eup %5681  ;;  %5393 = vmatpush3.msra.mxu1 %v2539_v33  ;;  %5394 = vmatprep.mubr.msk.f32.mxu1 %vm5757_vm2, %v5756_v45 }
0x15d9   :  { %5402 = vmatprep.subr.mxu1 %v5756_v45  ;;  %v2537_v21 = vmul.f32 %v5682_v48, %v5672_v25  ;;  %v3225_v25 = vld [vmem:[#allocation2 + $0x208] sm:$0xff] }
0x15da   :  { %v3034_v50 = vpop.permute.xlu1 %3033  ;;  %v2437_v9 = vpop.permute.xlu0 %2436 }
0x15db   :  { %5395 = vmatmul.mubr.msk.f32.vlgmr.msra.gmra.mxu1 %vm236_vm3, %v2537_v21  ;;  %v2447_v11 = vsel %vm236_vm3, %v6004_v4, %v2437_v9  ;;  %v3231_v4 = vld [vmem:[#allocation2 + $0x238] sm:$0xff] }
0x15dc   :  { %v5684_v41 = vpop.eup %5683  ;;  %5403 = vmatpush3.msra.mxu1 %v2704_v34  ;;  %5404 = vmatprep.mubr.msk.f32.mxu1 %vm5757_vm2, %v5756_v45 }
0x15dd   :  { %5412 = vmatprep.subr.mxu1 %v5756_v45  ;;  %v2702_v20 = vmul.f32 %v5684_v41, %v5674_v27  ;;  %v3223_v27 = vld [vmem:[#allocation2 + $0x1f8] sm:$0xff] }
0x15de   :  { %v2441_v10 = vpop.permute.xlu1 %2440 }
0x15df   :  { %5405 = vmatmul.mubr.msk.f32.vlgmr.msra.gmra.mxu1 %vm236_vm3, %v2702_v20  ;;  %v2448_v12 = vsel %vm906_vm5, %v2447_v11, %v2441_v10 }
0x15e0   :  { %v5686_v43 = vpop.eup %5685  ;;  %5413 = vmatpush3.msra.mxu1 %v2869_v42  ;;  %5414 = vmatprep.mubr.msk.f32.mxu1 %vm5757_vm2, %v5756_v45 }
0x15e1   :  { %5422 = vmatprep.subr.mxu1 %v5756_v45  ;;  %v2867_v44 = vmul.f32 %v5686_v43, %v5676_v29  ;;  %v3221_v29 = vld [vmem:[#allocation2 + $0x1e8] sm:$0xff] }
0x15e3   :  { %5415 = vmatmul.mubr.msk.f32.vlgmr.msra.gmra.mxu1 %vm236_vm3, %v2867_v44 }
0x15e4   :  { %v5688_v52 = vpop.eup %5687  ;;  %5423 = vmatpush3.msra.mxu1 %v3034_v50  ;;  %5424 = vmatprep.mubr.msk.f32.mxu1 %vm5757_vm2, %v5756_v45 }
0x15e5   :  { %v3032_v53 = vmul.f32 %v5688_v52, %v5678_v31  ;;  %5438 = vmatprep.subr.mxu1 %v3234_v61  ;;  %v3219_v31 = vld [vmem:[#allocation2 + $0x1d8] sm:$0xff] }
0x15e7   :  { %5425 = vmatmul.mubr.msk.f32.vlgmr.msra.gmra.mxu1 %vm236_vm3, %v3032_v53 }
0x15e8   :  { %5439 = vmatpush3.msra.mxu1 %v3234_v61 }
0x15e9   :  { %5440 = vmatprep.subr.mxu1 %v3233_v62 }
0x15ea   :  { %5441 = vmatpush3.msra.mxu1 %v3233_v62 }
0x15eb   :  { %5442 = vmatprep.subr.mxu1 %v3232_v0 }
0x15ec   :  { %5443 = vmatpush3.msra.mxu1 %v3232_v0 }
0x15ed   :  { %5444 = vmatprep.subr.mxu1 %v3231_v4 }
0x15ee   :  { %5445 = vmatpush3.msra.mxu1 %v3231_v4 }
0x15ef   :  { %5446 = vmatprep.subr.mxu1 %v3230_v22 }
0x15f0   :  { %5447 = vmatpush3.msra.mxu1 %v3230_v22 }
0x15f1   :  { %5448 = vmatprep.subr.mxu1 %v3229_v47 }
0x15f2   :  { %5449 = vmatpush3.msra.mxu1 %v3229_v47 }
0x15f3   :  { %5450 = vmatprep.subr.mxu1 %v3228_v49 }
0x15f4   :  { %5451 = vmatpush3.msra.mxu1 %v3228_v49 }
0x15f5   :  { %5452 = vmatprep.subr.mxu1 %v3227_v23 }
0x15f6   :  { %5453 = vmatpush3.msra.mxu1 %v3227_v23 }
0x15f7   :  { %5454 = vmatprep.subr.mxu1 %v3226_v24 }
0x15f8   :  { %5455 = vmatpush3.msra.mxu1 %v3226_v24 }
0x15f9   :  { %5456 = vmatprep.subr.mxu1 %v3225_v25 }
0x15fa   :  { %5457 = vmatpush3.msra.mxu1 %v3225_v25 }
0x15fb   :  { %5458 = vmatprep.subr.mxu1 %v3224_v26 }
0x15fc   :  { %5459 = vmatpush3.msra.mxu1 %v3224_v26 }
0x15fd   :  { %5460 = vmatprep.subr.mxu1 %v3223_v27 }
0x15fe   :  { %5461 = vmatpush3.msra.mxu1 %v3223_v27 }
0x15ff   :  { %5462 = vmatprep.subr.mxu1 %v3222_v28 }
0x1600   :  { %5463 = vmatpush3.msra.mxu1 %v3222_v28 }
0x1601   :  { %5464 = vmatprep.subr.mxu1 %v3221_v29 }
0x1602   :  { %5465 = vmatpush3.msra.mxu1 %v3221_v29 }
0x1603   :  { %5466 = vmatprep.subr.mxu1 %v3220_v30 }
0x1604   :  { %5467 = vmatpush3.msra.mxu1 %v3220_v30 }
0x1605   :  { %5468 = vmatprep.subr.mxu1 %v3219_v31 }
0x1606   :  { %5469 = vmatpush3.msra.mxu1 %v3219_v31 }
0x1607   :  { %5508 = vmatprep.subr.mxu1 %v5756_v45 }
0x1697   :  { %v2431_v56 = vpop.f32.mrf.mxu1 }
0x1698   :  { %2444 = vrot.lane.b32.xlu1 %v2431_v56, %s5771_s30 }
0x1699   :  { %v5386_v59 = vpop.f32.mrf.mxu1 }
0x169b   :  { %v2610_v60 = vpop.f32.mrf.mxu1 }
0x169d   :  { %v5396_v63 = vpop.f32.mrf.mxu1 }
0x169f   :  { %v2775_v1 = vpop.f32.mrf.mxu1 }
0x16a0   :  { %3110 = vrot.lane.b32.xlu0 %v2775_v1, %s5753_s13 }
0x16a1   :  { %v5406_v2 = vpop.f32.mrf.mxu1 }
0x16a3   :  { %v2940_v5 = vpop.f32.mrf.mxu1 }
0x16a4   :  { %3114 = vrot.lane.b32.xlu0 %v2940_v5, %s5770_s29 }
0x16a5   :  { %v5416_v6 = vpop.f32.mrf.mxu1 }
0x16a7   :  { %v3105_v7 = vpop.f32.mrf.mxu1 }
0x16a8   :  { %3118 = vrot.lane.b32.xlu1 %v3105_v7, %s5771_s30 }
0x16a9   :  { %v5426_v8 = vpop.f32.mrf.mxu1 }
0x170a   :  { %v2445_v13 = vpop.permute.xlu1 %2444 }
0x170b   :  { %v2449_v14 = vsel %vm908_vm6, %v2448_v12, %v2445_v13 }
0x170c   :  { %5435 = vmatprep.mubr.msk.f32.mxu0 %vm1588_vm7, %v2449_v14 }
0x1712   :  { %v3111_v15 = vpop.permute.xlu0 %3110 }
0x1713   :  { %v3121_v17 = vsel %vm236_vm3, %v2610_v60, %v3111_v15 }
0x1716   :  { %v3115_v16 = vpop.permute.xlu0 %3114 }
0x1717   :  { %v3122_v18 = vsel %vm906_vm5, %v3121_v17, %v3115_v16 }
0x171a   :  { %v3119_v19 = vpop.permute.xlu1 %3118 }
0x171b   :  { %v3123_v3 = vsel %vm908_vm6, %v3122_v18, %v3119_v19 }
0x171c   :  { %5436 = vmatmul.mubr.msk.f32.vlgmr.msra.gmra.mxu0 %vm1588_vm7, %v3123_v3 }
0x171d   :  { %5475 = vmatprep.mubr.msk.f32.mxu0 %vm5757_vm2, %v5756_v45 }
0x17dc   :  { %v5437_v33 = vpop.f32.mrf.mxu0 }
0x17dd   :  { %v3206_v34 = vadd.f32 %v5437_v33, %v4916_v32 }
0x17de   :  { %v3200_v35 = vpop.f32.mrf.mxu0 }
0x17df   :  { %v3212_v36 = vmul.f32 0.70710677, %v3206_v34  ;;  %v3201_v37 = vadd.f32 %v4916_v32, %v3200_v35  ;;  %v3210_v41 = vmul.f32 0.5, %v3206_v34 }
0x17e1   :  { %5689 = verf.f32 %v3212_v36  ;;  %v3211_v38 = vmul.f32 0.70710677, %v3201_v37  ;;  %v3209_v48 = vmul.f32 0.5, %v3201_v37 }
0x17e3   :  { %5691 = verf.f32 %v3211_v38 }
0x17ee   :  { %v5690_v39 = vpop.eup %5689 }
0x17ef   :  { %v3216_v46 = vadd.f32 1.0, %v5690_v39 }
0x17f0   :  { %v5692_v40 = vpop.eup %5691 }
0x17f1   :  { %v3215_v21 = vadd.f32 1.0, %v5692_v40  ;;  %v3218_v42 = vmul.f32 %v3216_v46, %v3210_v41 }
0x17f3   :  { %v3217_v20 = vmul.f32 %v3215_v21, %v3209_v48 }
0x17f5   :  { %5470 = vmatprep.mubr.f32.mxu1 %v3217_v20 }
0x17f6   :  { %5471 = vmatmul.mubr.f32.vlgmr.msra.gmra.mxu1 %v3218_v42 }
0x17f7   :  { %5510 = vmatprep.mubr.msk.f32.mxu1 %vm5757_vm2, %v5756_v45 }
0x18b6   :  { %v6143_v43 = vpop.f32.mrf.mxu1 }
0x18b8   :  { %v6145_v44 = vpop.f32.mrf.mxu1 }
0x18b9   :  { %3316 = vrot.lane.b32.xlu0 %v6145_v44, %s5758_s0 }
0x192b   :  { %v3317_v50 = vpop.permute.xlu0 %3316 }
0x192c   :  { %5474 = vmatpush3.xpose.msk.msra.mxu0 %vm236_vm3, %v3317_v50 }
0x192d   :  { %5478 = vmatprep.subr.mxu0 %v5756_v45 }
0x192f   :  { %5476 = vmatmul.mubr.msk.f32.vlgmr.msra.gmra.mxu0 %vm236_vm3, %v6145_v44 }
0x1930   :  { %5480 = vmatprep.mubr.msk.f32.mxu0 %vm5757_vm2, %v5756_v45 }
0x19ef   :  { %v3388_v52 = vpop.f32.mrf.mxu0 }
0x19f0   :  { %v3389_v53 = vadd.f32 %v3388_v52, %v5815_v51 }
0x19f1   :  { %v5477_v54 = vpop.f32.mrf.mxu0 }
0x19f2   :  { %v3392_v55 = vsel %vm236_vm3, %v3389_v53, -inf }
0x19f3   :  { %3393 = vmax.xlane.f32.xlu1 %v3392_v55 }
0x1a04   :  { %3481 = vrot.lane.b32.xlu1 %v6145_v44, %s5760_s1 }
0x1a08   :  { %3479 = vrot.lane.b32.xlu1 %v6145_v44, %s5761_s20 }
0x1a7c   :  { %v3394_v56 = vpop.xlane.xlu1 %3393 }
0x1a7d   :  { %v3395_v57 = vsub.f32 %v3389_v53, %v3394_v56 }
0x1a7f   :  { %v3396_v58 = vmul.f32 1.442695, %v3395_v57 }
0x1a80   :  { %v3482_v0 = vpop.permute.xlu1 %3481 }
0x1a81   :  { %5693 = vpow2.f32 %v3396_v58 }
0x1a84   :  { %v3480_v2 = vpop.permute.xlu1 %3479 }
0x1a8e   :  { %v5694_v59 = vpop.eup %5693 }
0x1a8f   :  { %v3398_v60 = vsel %vm236_vm3, %v5694_v59, 0.0 }
0x1a90   :  { %3399 = vadd.xlane.f32.xlu0 %v3398_v60 }
0x1aa6   :  { %3403 = vrot.lane.b32.xlu0 %v6145_v44, %s5762_s21 }
0x1b19   :  { %v3400_v61 = vpop.xlane.xlu0 %3399 }
0x1b1a   :  { %5695 = vrcp.f32 %v3400_v61 }
0x1b1d   :  { %v3404_v62 = vpop.permute.xlu0 %3403 }
0x1b1e   :  { %5479 = vmatpush3.msra.mxu0 %v3404_v62 }
0x1b1f   :  { %5483 = vmatprep.subr.mxu0 %v5756_v45 }
0x1b27   :  { %v5696_v63 = vpop.eup %5695 }
0x1b28   :  { %v3402_v1 = vmul.f32 %v5696_v63, %v5694_v59 }
0x1b2a   :  { %5481 = vmatmul.mubr.msk.f32.vlgmr.msra.gmra.mxu0 %vm236_vm3, %v3402_v1 }
0x1b2b   :  { %5484 = vmatpush3.xpose.msk.msra.mxu0 %vm236_vm3, %v3482_v0  ;;  %5485 = vmatprep.mubr.msk.f32.mxu0 %vm5757_vm2, %v5756_v45 }
0x1b2c   :  { %5488 = vmatprep.subr.mxu0 %v5756_v45 }
0x1b2e   :  { %5486 = vmatmul.mubr.msk.f32.vlgmr.msra.gmra.mxu0 %vm236_vm3, %v3480_v2 }
0x1b2f   :  { %5490 = vmatprep.mubr.msk.f32.mxu0 %vm5757_vm2, %v5756_v45 }
0x1bea   :  { %v6173_v5 = vpop.f32.mrf.mxu0 }
0x1bec   :  { %v5482_v6 = vpop.f32.mrf.mxu0 }
0x1bee   :  { %v3553_v7 = vpop.f32.mrf.mxu0 }
0x1bef   :  { %v3554_v8 = vadd.f32 %v3553_v7, %v5815_v51 }
0x1bf0   :  { %v5487_v9 = vpop.f32.mrf.mxu0 }
0x1bf1   :  { %v3557_v10 = vsel %vm236_vm3, %v3554_v8, -inf }
0x1bf2   :  { %3558 = vmax.xlane.f32.xlu0 %v3557_v10 }
0x1c08   :  { %3568 = vrot.lane.b32.xlu0 %v6145_v44, %s5763_s22 }
0x1c0c   :  { %3644 = vrot.lane.b32.xlu0 %v6145_v44, %s5764_s23 }
0x1c7b   :  { %v3559_v11 = vpop.xlane.xlu0 %3558 }
0x1c7c   :  { %v3560_v12 = vsub.f32 %v3554_v8, %v3559_v11 }
0x1c7e   :  { %v3561_v13 = vmul.f32 1.442695, %v3560_v12 }
0x1c7f   :  { %v3569_v14 = vpop.permute.xlu0 %3568 }
0x1c80   :  { %5697 = vpow2.f32 %v3561_v13  ;;  %5489 = vmatpush3.msra.mxu0 %v3569_v14 }
0x1c81   :  { %5493 = vmatprep.subr.mxu0 %v5756_v45 }
0x1c83   :  { %v3645_v4 = vpop.permute.xlu0 %3644 }
0x1c8d   :  { %v5698_v15 = vpop.eup %5697 }
0x1c8e   :  { %v3563_v16 = vsel %vm236_vm3, %v5698_v15, 0.0 }
0x1c8f   :  { %3564 = vadd.xlane.f32.xlu1 %v3563_v16 }
0x1ca0   :  { %3646 = vrot.lane.b32.xlu1 %v6145_v44, %s5765_s24 }
0x1d18   :  { %v3565_v17 = vpop.xlane.xlu1 %3564 }
0x1d19   :  { %5699 = vrcp.f32 %v3565_v17 }
0x1d1c   :  { %v3647_v3 = vpop.permute.xlu1 %3646 }
0x1d26   :  { %v5700_v18 = vpop.eup %5699 }
0x1d27   :  { %v3567_v19 = vmul.f32 %v5700_v18, %v5698_v15 }
0x1d29   :  { %5491 = vmatmul.mubr.msk.f32.vlgmr.msra.gmra.mxu0 %vm236_vm3, %v3567_v19 }
0x1d2a   :  { %5494 = vmatpush3.xpose.msk.msra.mxu0 %vm236_vm3, %v3647_v3  ;;  %5495 = vmatprep.mubr.msk.f32.mxu0 %vm5757_vm2, %v5756_v45 }
0x1d2b   :  { %5498 = vmatprep.subr.mxu0 %v5756_v45 }
0x1d2d   :  { %5496 = vmatmul.mubr.msk.f32.vlgmr.msra.gmra.mxu0 %vm236_vm3, %v3645_v4 }
0x1d2e   :  { %5500 = vmatprep.mubr.msk.f32.mxu0 %vm5757_vm2, %v5756_v45 }
0x1de9   :  { %v6193_v22 = vpop.f32.mrf.mxu0 }
0x1deb   :  { %v5492_v47 = vpop.f32.mrf.mxu0 }
0x1ded   :  { %v3718_v49 = vpop.f32.mrf.mxu0 }
0x1dee   :  { %v3719_v23 = vadd.f32 %v3718_v49, %v5815_v51 }
0x1def   :  { %v5497_v24 = vpop.f32.mrf.mxu0 }
0x1df0   :  { %v3722_v25 = vsel %vm236_vm3, %v3719_v23, -inf }
0x1df1   :  { %3723 = vmax.xlane.f32.xlu1 %v3722_v25 }
0x1e02   :  { %3811 = vrot.lane.b32.xlu1 %v6145_v44, %s5766_s25 }
0x1e06   :  { %3809 = vrot.lane.b32.xlu1 %v6145_v44, %s5767_s26 }
0x1e0a   :  { %4155 = vrot.lane.b32.xlu1 %v6143_v43, %s5760_s1 }
0x1e0e   :  { %4320 = vrot.lane.b32.xlu1 %v6143_v43, %s5765_s24 }
0x1e12   :  { %4485 = vrot.lane.b32.xlu1 %v6143_v43, %s5766_s25 }
0x1e7a   :  { %v3724_v26 = vpop.xlane.xlu1 %3723 }
0x1e7b   :  { %v3725_v27 = vsub.f32 %v3719_v23, %v3724_v26 }
0x1e7d   :  { %v3726_v28 = vmul.f32 1.442695, %v3725_v27 }
0x1e7e   :  { %v3812_v33 = vpop.permute.xlu1 %3811 }
0x1e7f   :  { %5701 = vpow2.f32 %v3726_v28 }
0x1e82   :  { %v3810_v35 = vpop.permute.xlu1 %3809 }
0x1e86   :  { %v4156_v38 = vpop.permute.xlu1 %4155 }
0x1e8a   :  { %v4321_v40 = vpop.permute.xlu1 %4320 }
0x1e8c   :  { %v5702_v29 = vpop.eup %5701 }
0x1e8d   :  { %v3728_v30 = vsel %vm236_vm3, %v5702_v29, 0.0 }
0x1e8e   :  { %3729 = vadd.xlane.f32.xlu0 %v3728_v30  ;;  %v4486_v48 = vpop.permute.xlu1 %4485 }
0x1ea4   :  { %3733 = vrot.lane.b32.xlu0 %v6145_v44, %s5768_s27 }
0x1ea8   :  { %3990 = vrot.lane.b32.xlu0 %v6143_v43, %s5758_s0 }
0x1eac   :  { %4153 = vrot.lane.b32.xlu0 %v6143_v43, %s5761_s20 }
0x1eb0   :  { %4318 = vrot.lane.b32.xlu0 %v6143_v43, %s5764_s23 }
0x1eb4   :  { %4483 = vrot.lane.b32.xlu0 %v6143_v43, %s5767_s26 }
0x1f17   :  { %v3730_v31 = vpop.xlane.xlu0 %3729 }
0x1f18   :  { %5703 = vrcp.f32 %v3730_v31 }
0x1f1b   :  { %v3734_v32 = vpop.permute.xlu0 %3733 }
0x1f1c   :  { %5499 = vmatpush3.msra.mxu0 %v3734_v32 }
0x1f1d   :  { %5503 = vmatprep.subr.mxu0 %v5756_v45 }
0x1f1f   :  { %v3991_v37 = vpop.permute.xlu0 %3990 }
0x1f23   :  { %v4154_v39 = vpop.permute.xlu0 %4153 }
0x1f25   :  { %v5704_v34 = vpop.eup %5703 }
0x1f26   :  { %v3732_v36 = vmul.f32 %v5704_v34, %v5702_v29 }
0x1f27   :  { %v4319_v46 = vpop.permute.xlu0 %4318 }
0x1f28   :  { %5501 = vmatmul.mubr.msk.f32.vlgmr.msra.gmra.mxu0 %vm236_vm3, %v3732_v36 }
0x1f29   :  { %5504 = vmatpush3.xpose.msk.msra.mxu0 %vm236_vm3, %v3812_v33  ;;  %5505 = vmatprep.mubr.msk.f32.mxu0 %vm5757_vm2, %v5756_v45 }
0x1f2a   :  { %5513 = vmatprep.subr.mxu0 %v5756_v45 }
0x1f2b   :  { %v4484_v21 = vpop.permute.xlu0 %4483 }
0x1f2c   :  { %5506 = vmatmul.mubr.msk.f32.vlgmr.msra.gmra.mxu0 %vm236_vm3, %v3810_v35 }
0x1f2d   :  { %5514 = vmatpush3.xpose.msk.msra.mxu0 %vm236_vm3, %v3991_v37  ;;  %5515 = vmatprep.mubr.msk.f32.mxu0 %vm5757_vm2, %v5756_v45 }
0x1f2e   :  { %5523 = vmatprep.subr.mxu0 %v5756_v45 }
0x1f30   :  { %5516 = vmatmul.mubr.msk.f32.vlgmr.msra.gmra.mxu0 %vm236_vm3, %v6143_v43 }
0x1f31   :  { %5524 = vmatpush3.xpose.msk.msra.mxu0 %vm236_vm3, %v4156_v38  ;;  %5525 = vmatprep.mubr.msk.f32.mxu0 %vm5757_vm2, %v5756_v45 }
0x1f32   :  { %5533 = vmatprep.subr.mxu0 %v5756_v45 }
0x1f34   :  { %5526 = vmatmul.mubr.msk.f32.vlgmr.msra.gmra.mxu0 %vm236_vm3, %v4154_v39 }
0x1f35   :  { %5534 = vmatpush3.xpose.msk.msra.mxu0 %vm236_vm3, %v4321_v40  ;;  %5535 = vmatprep.mubr.msk.f32.mxu0 %vm5757_vm2, %v5756_v45 }
0x1f36   :  { %5543 = vmatprep.subr.mxu0 %v5756_v45 }
0x1f38   :  { %5536 = vmatmul.mubr.msk.f32.vlgmr.msra.gmra.mxu0 %vm236_vm3, %v4319_v46 }
0x1f39   :  { %5544 = vmatpush3.xpose.msk.msra.mxu0 %vm236_vm3, %v4486_v48  ;;  %5545 = vmatprep.mubr.msk.f32.mxu0 %vm5757_vm2, %v5756_v45 }
0x1f3c   :  { %5546 = vmatmul.mubr.msk.f32.vlgmr.msra.gmra.mxu0 %vm236_vm3, %v4484_v21 }
0x1fe8   :  { %v6245_v41 = vpop.f32.mrf.mxu0 }
0x1fea   :  { %v5502_v20 = vpop.f32.mrf.mxu0 }
0x1fec   :  { %v3883_v42 = vpop.f32.mrf.mxu0 }
0x1fed   :  { %v3884_v50 = vadd.f32 %v3883_v42, %v5815_v51 }
0x1fee   :  { %v5507_v52 = vpop.f32.mrf.mxu0 }
0x1fef   :  { %v3887_v53 = vsel %vm236_vm3, %v3884_v50, -inf }
0x1ff0   :  { %3888 = vmax.xlane.f32.xlu1 %v3887_v53  ;;  %v4062_v54 = vpop.f32.mrf.mxu0  ;;  %v3238_v53 = vld [vmem:[#allocation2 + $0x270] sm:$0xff] }
0x1ff1   :  { %v4063_v55 = vadd.f32 %v4062_v54, %v5815_v51  ;;  %v3237_v54 = vld [vmem:[#allocation2 + $0x268] sm:$0xff]  ;;  %5553 = vmatprep.subr.mxu0 %v3238_v53 }
0x1ff2   :  { %v5517_v56 = vpop.f32.mrf.mxu0  ;;  %5554 = vmatpush3.msra.mxu0 %v3238_v53 }
0x1ff3   :  { %v4066_v57 = vsel %vm236_vm3, %v4063_v55, -inf  ;;  %5555 = vmatprep.subr.mxu0 %v3237_v54  ;;  %v3236_v56 = vld [vmem:[#allocation2 + $0x260] sm:$0xff] }
0x1ff4   :  { %4067 = vmax.xlane.f32.xlu0 %v4066_v57  ;;  %v4227_v58 = vpop.f32.mrf.mxu0  ;;  %5556 = vmatpush3.msra.mxu0 %v3237_v54  ;;  %v3235_v57 = vld [vmem:[#allocation2 + $0x258] sm:$0xff] }
0x1ff5   :  { %v4228_v59 = vadd.f32 %v4227_v58, %v5815_v51  ;;  %5557 = vmatprep.subr.mxu0 %v3236_v56 }
0x1ff6   :  { %v5527_v60 = vpop.f32.mrf.mxu0  ;;  %5558 = vmatpush3.msra.mxu0 %v3236_v56 }
0x1ff7   :  { %v4231_v61 = vsel %vm236_vm3, %v4228_v59, -inf  ;;  %5559 = vmatprep.subr.mxu0 %v3235_v57  ;;  %v4772_v60 = vld [vmem:[#allocation2 + $0x2f0] sm:$0xff] }
0x1ff8   :  { %4232 = vmax.xlane.f32.xlu0 %v4231_v61  ;;  %v4392_v62 = vpop.f32.mrf.mxu0  ;;  %5560 = vmatpush3.msra.mxu0 %v3235_v57 }
0x1ff9   :  { %v4393_v63 = vadd.f32 %v4392_v62, %v5815_v51  ;;  %v4771_v62 = vld [vmem:[#allocation2 + $0x2e8] sm:$0xff] }
0x1ffa   :  { %v5537_v0 = vpop.f32.mrf.mxu0 }
0x1ffb   :  { %v4396_v1 = vsel %vm236_vm3, %v4393_v63, -inf }
0x1ffc   :  { %4397 = vmax.xlane.f32.xlu1 %v4396_v1  ;;  %v4557_v2 = vpop.f32.mrf.mxu0 }
0x1ffd   :  { %v4558_v6 = vadd.f32 %v4557_v2, %v5815_v51 }
0x1ffe   :  { %v5547_v7 = vpop.f32.mrf.mxu0 }
0x1fff   :  { %v4561_v8 = vsel %vm236_vm3, %v4558_v6, -inf }
0x2000   :  { %4562 = vmax.xlane.f32.xlu0 %v4561_v8 }
0x200d   :  { %4077 = vrot.lane.b32.xlu1 %v6143_v43, %s5762_s21 }
0x2011   :  { %4242 = vrot.lane.b32.xlu1 %v6143_v43, %s5763_s22 }
0x2016   :  { %3898 = vrot.lane.b32.xlu0 %v6145_v44, %s5769_s28 }
0x2079   :  { %v3889_v9 = vpop.xlane.xlu1 %3888 }
0x207a   :  { %v3890_v10 = vsub.f32 %v3884_v50, %v3889_v9 }
0x207c   :  { %v3891_v11 = vmul.f32 1.442695, %v3890_v10 }
0x207d   :  { %v4068_v12 = vpop.xlane.xlu0 %4067 }
0x207e   :  { %5705 = vpow2.f32 %v3891_v11  ;;  %v4069_v13 = vsub.f32 %v4063_v55, %v4068_v12 }
0x2080   :  { %v4070_v51 = vmul.f32 1.442695, %v4069_v13 }
0x2081   :  { %v4233_v14 = vpop.xlane.xlu0 %4232 }
0x2082   :  { %5707 = vpow2.f32 %v4070_v51  ;;  %v4234_v15 = vsub.f32 %v4228_v59, %v4233_v14 }
0x2084   :  { %v4235_v16 = vmul.f32 1.442695, %v4234_v15 }
0x2085   :  { %v4398_v17 = vpop.xlane.xlu1 %4397 }
0x2086   :  { %5709 = vpow2.f32 %v4235_v16  ;;  %v4399_v18 = vsub.f32 %v4393_v63, %v4398_v17 }
0x2088   :  { %v4400_v19 = vmul.f32 1.442695, %v4399_v18 }
0x2089   :  { %v4563_v3 = vpop.xlane.xlu0 %4562  ;;  %v4078_v32 = vpop.permute.xlu1 %4077 }
0x208a   :  { %5711 = vpow2.f32 %v4400_v19  ;;  %v4564_v4 = vsub.f32 %v4558_v6, %v4563_v3  ;;  %v4770_v19 = vld [vmem:[#allocation2 + $0x2e0] sm:$0xff]  ;;  %v4768_v3 = vld [vmem:[#allocation2 + $0x2d0] sm:$0xff] }
0x208b   :  { %v5706_v47 = vpop.eup %5705 }
0x208c   :  { %v4565_v44 = vmul.f32 1.442695, %v4564_v4  ;;  %v3893_v49 = vsel %vm236_vm3, %v5706_v47, 0.0  ;;  %v4767_v4 = vld [vmem:[#allocation2 + $0x2c8] sm:$0xff] }
0x208d   :  { %3894 = vadd.xlane.f32.xlu1 %v3893_v49  ;;  %v3899_v23 = vpop.permute.xlu0 %3898  ;;  %v4243_v33 = vpop.permute.xlu1 %4242  ;;  %v4764_v49 = vld [vmem:[#allocation2 + $0x2b0] sm:$0xff] }
0x208e   :  { %5713 = vpow2.f32 %v4565_v44  ;;  %5509 = vmatpush3.msra.mxu1 %v3899_v23  ;;  %v4765_v44 = vld [vmem:[#allocation2 + $0x2b8] sm:$0xff]  ;;  %v4763_v23 = vld [vmem:[#allocation2 + $0x2a8] sm:$0xff] }
0x208f   :  { %v5708_v24 = vpop.eup %5707  ;;  %5518 = vmatprep.subr.mxu1 %v5756_v45 }
0x2090   :  { %v4072_v25 = vsel %vm236_vm3, %v5708_v24, 0.0 }
0x2091   :  { %4073 = vadd.xlane.f32.xlu0 %v4072_v25  ;;  %v4761_v25 = vld [vmem:[#allocation2 + $0x298] sm:$0xff] }
0x2093   :  { %v5710_v26 = vpop.eup %5709 }
0x2094   :  { %v4237_v27 = vsel %vm236_vm3, %v5710_v26, 0.0 }
0x2095   :  { %4238 = vadd.xlane.f32.xlu1 %v4237_v27  ;;  %v4759_v27 = vld [vmem:[#allocation2 + $0x288] sm:$0xff] }
0x2097   :  { %v5712_v28 = vpop.eup %5711 }
0x2098   :  { %v4402_v29 = vsel %vm236_vm3, %v5712_v28, 0.0 }
0x2099   :  { %4403 = vadd.xlane.f32.xlu0 %v4402_v29  ;;  %v4943_v29 = vld [vmem:[#allocation2 + $0x278] ss:$0 sm:$0xff] }
0x209b   :  { %v5714_v30 = vpop.eup %5713 }
0x209c   :  { %v4567_v31 = vsel %vm236_vm3, %v5714_v30, 0.0 }
0x209d   :  { %4568 = vadd.xlane.f32.xlu1 %v4567_v31 }
0x20ae   :  { %4572 = vrot.lane.b32.xlu1 %v6143_v43, %s5769_s28 }
0x20af   :  { %4407 = vrot.lane.b32.xlu0 %v6143_v43, %s5768_s27 }
0x20b2   :  { %3979 = vrot.lane.b32.xlu1 %v6245_v41, %s5770_s29 }
0x20b3   :  { %3975 = vrot.lane.b32.xlu0 %v6193_v22, %s5753_s13 }
0x2116   :  { %v3895_v34 = vpop.xlane.xlu1 %3894 }
0x2117   :  { %5715 = vrcp.f32 %v3895_v34 }
0x211a   :  { %v4074_v35 = vpop.xlane.xlu0 %4073 }
0x211b   :  { %5717 = vrcp.f32 %v4074_v35 }
0x211e   :  { %v4239_v36 = vpop.xlane.xlu1 %4238 }
0x211f   :  { %5719 = vrcp.f32 %v4239_v36 }
0x2122   :  { %v4404_v37 = vpop.xlane.xlu0 %4403 }
0x2123   :  { %5721 = vrcp.f32 %v4404_v37 }
0x2124   :  { %v5716_v38 = vpop.eup %5715 }
0x2125   :  { %v3897_v39 = vmul.f32 %v5716_v38, %v5706_v47  ;;  %v4766_v47 = vld [vmem:[#allocation2 + $0x2c0] sm:$0xff] }
0x2126   :  { %v4569_v40 = vpop.xlane.xlu1 %4568  ;;  %v4408_v21 = vpop.permute.xlu0 %4407 }
0x2127   :  { %5723 = vrcp.f32 %v4569_v40  ;;  %5511 = vmatmul.mubr.msk.f32.vlgmr.msra.gmra.mxu1 %vm236_vm3, %v3897_v39 }
0x2128   :  { %v5718_v43 = vpop.eup %5717  ;;  %5519 = vmatpush3.msra.mxu1 %v4078_v32  ;;  %5520 = vmatprep.mubr.msk.f32.mxu1 %vm5757_vm2, %v5756_v45 }
0x2129   :  { %5528 = vmatprep.subr.mxu1 %v5756_v45  ;;  %v4076_v22 = vmul.f32 %v5718_v43, %v5708_v24  ;;  %v4762_v24 = vld [vmem:[#allocation2 + $0x2a0] sm:$0xff] }
0x212a   :  { %v4573_v42 = vpop.permute.xlu1 %4572  ;;  %v3976_v8 = vpop.permute.xlu0 %3975 }
0x212b   :  { %5521 = vmatmul.mubr.msk.f32.vlgmr.msra.gmra.mxu1 %vm236_vm3, %v4076_v22  ;;  %v3986_v10 = vsel %vm236_vm3, %v6173_v5, %v3976_v8  ;;  %v4769_v5 = vld [vmem:[#allocation2 + $0x2d8] sm:$0xff] }
0x212c   :  { %v5720_v46 = vpop.eup %5719  ;;  %5529 = vmatpush3.msra.mxu1 %v4243_v33  ;;  %5530 = vmatprep.mubr.msk.f32.mxu1 %vm5757_vm2, %v5756_v45 }
0x212d   :  { %5538 = vmatprep.subr.mxu1 %v5756_v45  ;;  %v4241_v48 = vmul.f32 %v5720_v46, %v5710_v26  ;;  %v4760_v26 = vld [vmem:[#allocation2 + $0x290] sm:$0xff] }
0x212e   :  { %v3980_v9 = vpop.permute.xlu1 %3979 }
0x212f   :  { %5531 = vmatmul.mubr.msk.f32.vlgmr.msra.gmra.mxu1 %vm236_vm3, %v4241_v48  ;;  %v3987_v11 = vsel %vm906_vm5, %v3986_v10, %v3980_v9  ;;  %v4946_v48 = vld [vmem:[#allocation2 + $0x300] ss:$0 sm:$0xff] }
0x2130   :  { %v5722_v41 = vpop.eup %5721  ;;  %5539 = vmatpush3.msra.mxu1 %v4408_v21  ;;  %5540 = vmatprep.mubr.msk.f32.mxu1 %vm5757_vm2, %v5756_v45 }
0x2131   :  { %5548 = vmatprep.subr.mxu1 %v5756_v45  ;;  %v4406_v20 = vmul.f32 %v5722_v41, %v5712_v28  ;;  %v4758_v28 = vld [vmem:[#allocation2 + $0x280] sm:$0xff] }
0x2133   :  { %5541 = vmatmul.mubr.msk.f32.vlgmr.msra.gmra.mxu1 %vm236_vm3, %v4406_v20 }
0x2134   :  { %v5724_v50 = vpop.eup %5723  ;;  %5549 = vmatpush3.msra.mxu1 %v4573_v42  ;;  %5550 = vmatprep.mubr.msk.f32.mxu1 %vm5757_vm2, %v5756_v45  ;;  %v4773_v45 = vld [vmem:[#allocation2 + $0x2f8] sm:$0xff] }
0x2135   :  { %v4571_v52 = vmul.f32 %v5724_v50, %v5714_v30  ;;  %5564 = vmatprep.subr.mxu1 %v4773_v45 }
0x2137   :  { %5551 = vmatmul.mubr.msk.f32.vlgmr.msra.gmra.mxu1 %vm236_vm3, %v4571_v52 }
0x2138   :  { %5565 = vmatpush3.msra.mxu1 %v4773_v45 }
0x2139   :  { %5566 = vmatprep.subr.mxu1 %v4772_v60 }
0x213a   :  { %5567 = vmatpush3.msra.mxu1 %v4772_v60 }
0x213b   :  { %5568 = vmatprep.subr.mxu1 %v4771_v62 }
0x213c   :  { %5569 = vmatpush3.msra.mxu1 %v4771_v62 }
0x213d   :  { %5570 = vmatprep.subr.mxu1 %v4770_v19 }
0x213e   :  { %5571 = vmatpush3.msra.mxu1 %v4770_v19 }
0x213f   :  { %5572 = vmatprep.subr.mxu1 %v4769_v5 }
0x2140   :  { %5573 = vmatpush3.msra.mxu1 %v4769_v5 }
0x2141   :  { %5574 = vmatprep.subr.mxu1 %v4768_v3 }
0x2142   :  { %5575 = vmatpush3.msra.mxu1 %v4768_v3 }
0x2143   :  { %5576 = vmatprep.subr.mxu1 %v4767_v4 }
0x2144   :  { %5577 = vmatpush3.msra.mxu1 %v4767_v4 }
0x2145   :  { %5578 = vmatprep.subr.mxu1 %v4766_v47 }
0x2146   :  { %5579 = vmatpush3.msra.mxu1 %v4766_v47 }
0x2147   :  { %5580 = vmatprep.subr.mxu1 %v4765_v44 }
0x2148   :  { %5581 = vmatpush3.msra.mxu1 %v4765_v44 }
0x2149   :  { %5582 = vmatprep.subr.mxu1 %v4764_v49 }
0x214a   :  { %5583 = vmatpush3.msra.mxu1 %v4764_v49 }
0x214b   :  { %5584 = vmatprep.subr.mxu1 %v4763_v23 }
0x214c   :  { %5585 = vmatpush3.msra.mxu1 %v4763_v23 }
0x214d   :  { %5586 = vmatprep.subr.mxu1 %v4762_v24 }
0x214e   :  { %5587 = vmatpush3.msra.mxu1 %v4762_v24 }
0x214f   :  { %5588 = vmatprep.subr.mxu1 %v4761_v25 }
0x2150   :  { %5589 = vmatpush3.msra.mxu1 %v4761_v25 }
0x2151   :  { %5590 = vmatprep.subr.mxu1 %v4760_v26 }
0x2152   :  { %5591 = vmatpush3.msra.mxu1 %v4760_v26 }
0x2153   :  { %5592 = vmatprep.subr.mxu1 %v4759_v27 }
0x2154   :  { %5593 = vmatpush3.msra.mxu1 %v4759_v27 }
0x2155   :  { %5594 = vmatprep.subr.mxu1 %v4758_v28 }
0x2156   :  { %5595 = vmatpush3.msra.mxu1 %v4758_v28 }
0x21e7   :  { %v3970_v55 = vpop.f32.mrf.mxu1 }
0x21e8   :  { %3983 = vrot.lane.b32.xlu1 %v3970_v55, %s5771_s30 }
0x21e9   :  { %v5512_v58 = vpop.f32.mrf.mxu1 }
0x21eb   :  { %v4149_v59 = vpop.f32.mrf.mxu1 }
0x21ed   :  { %v5522_v61 = vpop.f32.mrf.mxu1 }
0x21ef   :  { %v4314_v63 = vpop.f32.mrf.mxu1 }
0x21f0   :  { %4649 = vrot.lane.b32.xlu0 %v4314_v63, %s5753_s13 }
0x21f1   :  { %v5532_v0 = vpop.f32.mrf.mxu1 }
0x21f3   :  { %v4479_v1 = vpop.f32.mrf.mxu1 }
0x21f4   :  { %4653 = vrot.lane.b32.xlu0 %v4479_v1, %s5770_s29 }
0x21f5   :  { %v5542_v2 = vpop.f32.mrf.mxu1 }
0x21f7   :  { %v4644_v6 = vpop.f32.mrf.mxu1 }
0x21f8   :  { %4657 = vrot.lane.b32.xlu1 %v4644_v6, %s5771_s30 }
0x21f9   :  { %v5552_v7 = vpop.f32.mrf.mxu1 }
0x225a   :  { %v3984_v12 = vpop.permute.xlu1 %3983 }
0x225b   :  { %v3988_v13 = vsel %vm908_vm6, %v3987_v11, %v3984_v12 }
0x225c   :  { %5561 = vmatprep.mubr.msk.f32.mxu0 %vm1588_vm7, %v3988_v13 }
0x2262   :  { %v4650_v51 = vpop.permute.xlu0 %4649 }
0x2263   :  { %v4660_v15 = vsel %vm236_vm3, %v4149_v59, %v4650_v51 }
0x2266   :  { %v4654_v14 = vpop.permute.xlu0 %4653 }
0x2267   :  { %v4661_v16 = vsel %vm906_vm5, %v4660_v15, %v4654_v14 }
0x226a   :  { %v4658_v17 = vpop.permute.xlu1 %4657 }
0x226b   :  { %v4662_v18 = vsel %vm908_vm6, %v4661_v16, %v4658_v17 }
0x226c   :  { %5562 = vmatmul.mubr.msk.f32.vlgmr.msra.gmra.mxu0 %vm1588_vm7, %v4662_v18 }
0x232c   :  { %v5563_v30 = vpop.f32.mrf.mxu0 }
0x232d   :  { %v4745_v31 = vadd.f32 %v5563_v30, %v4943_v29 }
0x232e   :  { %v4739_v32 = vpop.f32.mrf.mxu0 }
0x232f   :  { %v4751_v33 = vmul.f32 0.70710677, %v4745_v31  ;;  %v4740_v34 = vadd.f32 %v4943_v29, %v4739_v32  ;;  %v4749_v43 = vmul.f32 0.5, %v4745_v31 }
0x2331   :  { %5725 = verf.f32 %v4751_v33  ;;  %v4750_v35 = vmul.f32 0.70710677, %v4740_v34  ;;  %v4748_v39 = vmul.f32 0.5, %v4740_v34 }
0x2333   :  { %5727 = verf.f32 %v4750_v35 }
0x233e   :  { %v5726_v36 = vpop.eup %5725 }
0x233f   :  { %v4755_v38 = vadd.f32 1.0, %v5726_v36 }
0x2340   :  { %v5728_v37 = vpop.eup %5727 }
0x2341   :  { %v4754_v40 = vadd.f32 1.0, %v5728_v37  ;;  %v4757_v46 = vmul.f32 %v4755_v38, %v4749_v43 }
0x2343   :  { %v4756_v22 = vmul.f32 %v4754_v40, %v4748_v39 }
0x2345   :  { %5596 = vmatprep.mubr.f32.mxu1 %v4756_v22 }
0x2346   :  { %5597 = vmatmul.mubr.f32.vlgmr.msra.gmra.mxu1 %v4757_v46 }
0x2406   :  { %v5598_v21 = vpop.f32.mrf.mxu1 }
0x2407   :  { %v4851_v41 = vadd.f32 %v5598_v21, %v4946_v48 }
0x2408   :  { %v4845_v20 = vpop.f32.mrf.mxu1 }
0x2409   :  { %4855 = vst [vmem:[%s6314_s2 + $0x8] sm:$0xff] %v4851_v41  ;;  %v4846_v42 = vadd.f32 %v4946_v48, %v4845_v20 }
0x240b   :  { %4854 = vst [vmem:[%s6314_s2] sm:$0xff] %v4846_v42 }
0x240c   :  { %4860 = vsyncpa [#allocation3], 1 }

</bundles_post_ra>
